<compile_context>
chip_gen: v7x
topology: tpu7x:2x2x1
jax: 0.10.0
libtpu: 0.0.40
codegen_flags: <defaults>
</compile_context>

<pallas_src>
import jax
import jax.numpy as jnp
from jax.experimental import pallas as pl
from jax.experimental.pallas import tpu as pltpu

# ---- module hyper-parameters (mirror the PyTorch __init__) ----
KERNEL_SIZE = 13
PADDING = 6
TAU = 2.0
FIRING_THRES = 0.5


def _decoder_conv_lif_kernel(w_ref, x_ref, o_ref, xpad_ref, rhs_ref):
    """One grid step = one block of NB samples; the full T loop runs in-kernel.

    w_ref   : [O, K*C]       bf16  conv weights, row-block k of K*C <-> tap k
    x_ref   : [T, NB, C, L]  bf16  un-padded input block
    o_ref   : [T, O, NB*L]   f32   spike output (samples flattened onto lanes)
    xpad_ref: [NB, C, L+2P]  bf16  per-sample zero-padded scratch
    rhs_ref : [K*C, NB*L]    bf16  im2col scratch (RHS of the conv matmul)
    """
    T, NB, C, L = x_ref.shape
    O = o_ref.shape[1]

    # Zero the padded scratch once; only the interior [P:P+L] is rewritten each
    # timestep, so the halo columns stay zero (replaces the wrapper jnp.pad pass).
    xpad_ref[...] = jnp.zeros(xpad_ref.shape, xpad_ref.dtype)

    w = w_ref[...]                                  # [O, K*C], resident across T

    def step(t, v):
        # Un-padded tile for timestep t -> interior of the padded scratch.
        xpad_ref[:, :, PADDING:PADDING + L] = x_ref[t]

        # im2col:  rhs[k*C + c, n*L + l] = xpad[n, c, l + k]
        # (NB and K are small compile-time constants -> static unroll)
        for n in range(NB):
            for k in range(KERNEL_SIZE):
                rhs_ref[k * C:(k + 1) * C, n * L:(n + 1) * L] = (
                    xpad_ref[n, :, k:k + L])

        # Whole Conv1d for this timestep: a single MXU matmul, f32 accumulation.
        cur = jnp.dot(w, rhs_ref[...], preferred_element_type=jnp.float32)

        # LIF (spikingjelly LIFNode: decay_input=True, hard reset to v_reset=0):
        #   v <- v + (I - v)/tau ; spike = (v >= v_th) ; v <- 0 where spiked.
        v = v + (cur - v) * (1.0 / TAU)
        spiked = v >= FIRING_THRES
        o_ref[t] = jnp.where(spiked, 1.0, 0.0).astype(o_ref.dtype)
        return jnp.where(spiked, 0.0, v)

    v0 = jnp.zeros((O, NB * L), jnp.float32)
    jax.lax.fori_loop(0, T, step, v0, unroll=(T <= 8))


def decoder_convolution_layer(x, weight, *, block_n=None):
    """x: [N, T, C, L] f32, weight: [O, C, K] f32  ->  spikes [N, T, O, L] f32."""
    N, T, C, L = x.shape
    O, Cw, K = weight.shape
    assert Cw == C and K == KERNEL_SIZE
    NB = N if block_n is None else block_n
    assert N % NB == 0
    # Output blocks are lane-flattened to NB*L; sub-full blocks must be 128-aligned.
    assert NB == N or (NB * L) % 128 == 0
    Lp = L + 2 * PADDING

    # Wrapper-side layout plumbing (transpose / reshape / cast only — no padding):
    #   x -> [T, N, C, L] bf16 so x_ref[t] is a contiguous [NB, C, L] tile,
    #   w -> [O, K*C]     bf16 matching the kernel's im2col row order (k*C + c).
    x_r = jnp.transpose(x, (1, 0, 2, 3)).astype(jnp.bfloat16)
    w_r = jnp.transpose(weight, (0, 2, 1)).reshape(O, K * C).astype(jnp.bfloat16)

    # VMEM per block ~ 2*(x_blk + out_blk) + scratch; tiny here. For large T/L,
    # pick NB (or chunk T) against the ~32 MiB scoped default (64 MiB phys on v7x).
    out = pl.pallas_call(
        _decoder_conv_lif_kernel,
        out_shape=jax.ShapeDtypeStruct((T, O, N * L), jnp.float32),
        grid_spec=pltpu.PrefetchScalarGridSpec(
            num_scalar_prefetch=0,
            grid=(N // NB,),                 # sample blocks only; T is in-kernel
            in_specs=[
                pl.BlockSpec((O, K * C), lambda i: (0, 0)),
                pl.BlockSpec((T, NB, C, L), lambda i: (0, i, 0, 0)),
            ],
            out_specs=pl.BlockSpec((T, O, NB * L), lambda i: (0, 0, i)),
            scratch_shapes=[
                pltpu.VMEM((NB, C, Lp), jnp.bfloat16),
                pltpu.VMEM((K * C, NB * L), jnp.bfloat16),
            ],
        ),
        compiler_params=pltpu.CompilerParams(
            dimension_semantics=("parallel",),
        ),
    )(w_r, x_r)

    # [T, O, N*L] -> [N, T, O, L]
    return out.reshape(T, O, N, L).transpose(2, 0, 1, 3)


def _reference(x, weight):
    """Pure-JAX reference of the PyTorch forward (Conv1d + stateful LIF over T).

    Uses the same mixed precision as the kernel (bf16 conv operands, f32
    accumulation, f32 LIF state / threshold), mirroring AMP-style execution.
    """
    N, T, C, L = x.shape
    O = weight.shape[0]
    xb = x.astype(jnp.bfloat16)
    wb = weight.astype(jnp.bfloat16)
    v = jnp.zeros((N, O, L), jnp.float32)
    outs = []
    for t in range(T):
        cur = jax.lax.conv_general_dilated(
            xb[:, t], wb, window_strides=(1,), padding=((PADDING, PADDING),),
            dimension_numbers=("NCH", "OIH", "NCH"),
            preferred_element_type=jnp.float32,
        )
        v = v + (cur - v) * (1.0 / TAU)
        spk = (v >= FIRING_THRES).astype(jnp.float32)
        v = jnp.where(v >= FIRING_THRES, 0.0, v)
        outs.append(spk)
    return jnp.stack(outs, axis=1)


if __name__ == "__main__":
    # Small shapes consistent with the module: x is [N, T, C, L].
    N, T, C, L = 2, 4, 4, 16
    OUT_CHANNELS = 8

    key = jax.random.PRNGKey(0)
    kx, kw = jax.random.split(key)
    x = jax.random.normal(kx, (N, T, C, L), dtype=jnp.float32)

    # Deterministic Conv1d weight init (PyTorch-style uniform bound 1/sqrt(C*K)).
    bound = float((C * KERNEL_SIZE) ** -0.5)
    weight = jax.random.uniform(
        kw, (OUT_CHANNELS, C, KERNEL_SIZE), dtype=jnp.float32,
        minval=-bound, maxval=bound,
    )

    out = jax.jit(decoder_convolution_layer)(x, weight)
    out = jax.block_until_ready(out)

    ref = _reference(x, weight)
    assert out.shape == (N, T, OUT_CHANNELS, L)
    assert jnp.allclose(out, ref, atol=1e-5), "mismatch vs reference"

    print("KERNEL_OK")
</pallas_src>

<mosaic_0001>
module attributes {stable_mosaic.version = 11 : i64} {
  func.func @_decoder_conv_lif_kernel(%arg0: i32, %arg1: memref<8x52xbf16, #tpu.memory_space<vmem>>, %arg2: memref<4x2x4x16xbf16, #tpu.memory_space<vmem>>, %arg3: memref<4x8x32xf32, #tpu.memory_space<vmem>>, %arg4: memref<2x4x28xbf16, #tpu.memory_space<vmem>>, %arg5: memref<52x32xbf16, #tpu.memory_space<vmem>>) attributes {dimension_semantics = [#tpu.dimension_semantics<parallel>], iteration_bounds = array<i64: 1>, scalar_prefetch = 0 : i64, scratch_operands = 2 : i64, tpu.core_type = #tpu.core_type<tc>, window_params = [{pipeline_mode = #tpu.pipeline_mode<synchronous>, transform_indices = @transform_0, window_bounds = array<i64: 8, 52>}, {transform_indices = @transform_1, window_bounds = array<i64: 4, 2, 4, 16>}, {transform_indices = @transform_2, window_bounds = array<i64: 4, 8, 32>}]} {
    %cst = arith.constant 0.000000e+00 : bf16
    %0 = vector.broadcast %cst : bf16 to vector<2x4x28xbf16>
    %c0 = arith.constant 0 : index
    %c0_0 = arith.constant 0 : index
    %c0_1 = arith.constant 0 : index
    %1 = vector.load %arg4[%c0, %c0_0, %c0_1] : memref<2x4x28xbf16, #tpu.memory_space<vmem>>, vector<2x4x28xbf16>
    tpu.vector_store %arg4[%c0, %c0_0, %c0_1], %0 {strides = array<i32>} : memref<2x4x28xbf16, #tpu.memory_space<vmem>>, vector<2x4x28xbf16>,
    %c0_2 = arith.constant 0 : index
    %c0_3 = arith.constant 0 : index
    %2 = vector.load %arg1[%c0_2, %c0_3] : memref<8x52xbf16, #tpu.memory_space<vmem>>, vector<8x52xbf16>
    %cst_4 = arith.constant 0.000000e+00 : f32
    %3 = vector.broadcast %cst_4 : f32 to vector<8x32xf32>
    %c0_i32 = arith.constant 0 : i32
    %4 = arith.index_cast %c0_i32 : i32 to index
    %c0_5 = arith.constant 0 : index
    %c0_6 = arith.constant 0 : index
    %c0_7 = arith.constant 0 : index
    %5 = vector.load %arg2[%4, %c0_5, %c0_6, %c0_7] : memref<4x2x4x16xbf16, #tpu.memory_space<vmem>>, vector<1x2x4x16xbf16>
    %6 = vector.shape_cast %5 : vector<1x2x4x16xbf16> to vector<2x4x16xbf16>
    %c0_8 = arith.constant 0 : index
    %c0_9 = arith.constant 0 : index
    %c6 = arith.constant 6 : index
    %7 = vector.load %arg4[%c0_8, %c0_9, %c6] : memref<2x4x28xbf16, #tpu.memory_space<vmem>>, vector<2x4x16xbf16>
    tpu.vector_store %arg4[%c0_8, %c0_9, %c6], %6 {strides = array<i32>} : memref<2x4x28xbf16, #tpu.memory_space<vmem>>, vector<2x4x16xbf16>,
    %c0_10 = arith.constant 0 : index
    %c0_11 = arith.constant 0 : index
    %c0_12 = arith.constant 0 : index
    %8 = vector.load %arg4[%c0_10, %c0_11, %c0_12] : memref<2x4x28xbf16, #tpu.memory_space<vmem>>, vector<1x4x16xbf16>
    %9 = vector.shape_cast %8 : vector<1x4x16xbf16> to vector<4x16xbf16>
    %c0_13 = arith.constant 0 : index
    %c0_14 = arith.constant 0 : index
    %10 = vector.load %arg5[%c0_13, %c0_14] : memref<52x32xbf16, #tpu.memory_space<vmem>>, vector<4x16xbf16>
    tpu.vector_store %arg5[%c0_13, %c0_14], %9 {strides = array<i32>} : memref<52x32xbf16, #tpu.memory_space<vmem>>, vector<4x16xbf16>,
    %c0_15 = arith.constant 0 : index
    %c0_16 = arith.constant 0 : index
    %c1 = arith.constant 1 : index
    %11 = vector.load %arg4[%c0_15, %c0_16, %c1] : memref<2x4x28xbf16, #tpu.memory_space<vmem>>, vector<1x4x16xbf16>
    %12 = vector.shape_cast %11 : vector<1x4x16xbf16> to vector<4x16xbf16>
    %c4 = arith.constant 4 : index
    %c0_17 = arith.constant 0 : index
    %13 = vector.load %arg5[%c4, %c0_17] : memref<52x32xbf16, #tpu.memory_space<vmem>>, vector<4x16xbf16>
    tpu.vector_store %arg5[%c4, %c0_17], %12 {strides = array<i32>} : memref<52x32xbf16, #tpu.memory_space<vmem>>, vector<4x16xbf16>,
    %c0_18 = arith.constant 0 : index
    %c0_19 = arith.constant 0 : index
    %c2 = arith.constant 2 : index
    %14 = vector.load %arg4[%c0_18, %c0_19, %c2] : memref<2x4x28xbf16, #tpu.memory_space<vmem>>, vector<1x4x16xbf16>
    %15 = vector.shape_cast %14 : vector<1x4x16xbf16> to vector<4x16xbf16>
    %c8 = arith.constant 8 : index
    %c0_20 = arith.constant 0 : index
    %16 = vector.load %arg5[%c8, %c0_20] : memref<52x32xbf16, #tpu.memory_space<vmem>>, vector<4x16xbf16>
    tpu.vector_store %arg5[%c8, %c0_20], %15 {strides = array<i32>} : memref<52x32xbf16, #tpu.memory_space<vmem>>, vector<4x16xbf16>,
    %c0_21 = arith.constant 0 : index
    %c0_22 = arith.constant 0 : index
    %c3 = arith.constant 3 : index
    %17 = vector.load %arg4[%c0_21, %c0_22, %c3] : memref<2x4x28xbf16, #tpu.memory_space<vmem>>, vector<1x4x16xbf16>
    %18 = vector.shape_cast %17 : vector<1x4x16xbf16> to vector<4x16xbf16>
    %c12 = arith.constant 12 : index
    %c0_23 = arith.constant 0 : index
    %19 = vector.load %arg5[%c12, %c0_23] : memref<52x32xbf16, #tpu.memory_space<vmem>>, vector<4x16xbf16>
    tpu.vector_store %arg5[%c12, %c0_23], %18 {strides = array<i32>} : memref<52x32xbf16, #tpu.memory_space<vmem>>, vector<4x16xbf16>,
    %c0_24 = arith.constant 0 : index
    %c0_25 = arith.constant 0 : index
    %c4_26 = arith.constant 4 : index
    %20 = vector.load %arg4[%c0_24, %c0_25, %c4_26] : memref<2x4x28xbf16, #tpu.memory_space<vmem>>, vector<1x4x16xbf16>
    %21 = vector.shape_cast %20 : vector<1x4x16xbf16> to vector<4x16xbf16>
    %c16 = arith.constant 16 : index
    %c0_27 = arith.constant 0 : index
    %22 = vector.load %arg5[%c16, %c0_27] : memref<52x32xbf16, #tpu.memory_space<vmem>>, vector<4x16xbf16>
    tpu.vector_store %arg5[%c16, %c0_27], %21 {strides = array<i32>} : memref<52x32xbf16, #tpu.memory_space<vmem>>, vector<4x16xbf16>,
    %c0_28 = arith.constant 0 : index
    %c0_29 = arith.constant 0 : index
    %c5 = arith.constant 5 : index
    %23 = vector.load %arg4[%c0_28, %c0_29, %c5] : memref<2x4x28xbf16, #tpu.memory_space<vmem>>, vector<1x4x16xbf16>
    %24 = vector.shape_cast %23 : vector<1x4x16xbf16> to vector<4x16xbf16>
    %c20 = arith.constant 20 : index
    %c0_30 = arith.constant 0 : index
    %25 = vector.load %arg5[%c20, %c0_30] : memref<52x32xbf16, #tpu.memory_space<vmem>>, vector<4x16xbf16>
    tpu.vector_store %arg5[%c20, %c0_30], %24 {strides = array<i32>} : memref<52x32xbf16, #tpu.memory_space<vmem>>, vector<4x16xbf16>,
    %c0_31 = arith.constant 0 : index
    %c0_32 = arith.constant 0 : index
    %c6_33 = arith.constant 6 : index
    %26 = vector.load %arg4[%c0_31, %c0_32, %c6_33] : memref<2x4x28xbf16, #tpu.memory_space<vmem>>, vector<1x4x16xbf16>
    %27 = vector.shape_cast %26 : vector<1x4x16xbf16> to vector<4x16xbf16>
    %c24 = arith.constant 24 : index
    %c0_34 = arith.constant 0 : index
    %28 = vector.load %arg5[%c24, %c0_34] : memref<52x32xbf16, #tpu.memory_space<vmem>>, vector<4x16xbf16>
    tpu.vector_store %arg5[%c24, %c0_34], %27 {strides = array<i32>} : memref<52x32xbf16, #tpu.memory_space<vmem>>, vector<4x16xbf16>,
    %c0_35 = arith.constant 0 : index
    %c0_36 = arith.constant 0 : index
    %c7 = arith.constant 7 : index
    %29 = vector.load %arg4[%c0_35, %c0_36, %c7] : memref<2x4x28xbf16, #tpu.memory_space<vmem>>, vector<1x4x16xbf16>
    %30 = vector.shape_cast %29 : vector<1x4x16xbf16> to vector<4x16xbf16>
    %c28 = arith.constant 28 : index
    %c0_37 = arith.constant 0 : index
    %31 = vector.load %arg5[%c28, %c0_37] : memref<52x32xbf16, #tpu.memory_space<vmem>>, vector<4x16xbf16>
    tpu.vector_store %arg5[%c28, %c0_37], %30 {strides = array<i32>} : memref<52x32xbf16, #tpu.memory_space<vmem>>, vector<4x16xbf16>,
    %c0_38 = arith.constant 0 : index
    %c0_39 = arith.constant 0 : index
    %c8_40 = arith.constant 8 : index
    %32 = vector.load %arg4[%c0_38, %c0_39, %c8_40] : memref<2x4x28xbf16, #tpu.memory_space<vmem>>, vector<1x4x16xbf16>
    %33 = vector.shape_cast %32 : vector<1x4x16xbf16> to vector<4x16xbf16>
    %c32 = arith.constant 32 : index
    %c0_41 = arith.constant 0 : index
    %34 = vector.load %arg5[%c32, %c0_41] : memref<52x32xbf16, #tpu.memory_space<vmem>>, vector<4x16xbf16>
    tpu.vector_store %arg5[%c32, %c0_41], %33 {strides = array<i32>} : memref<52x32xbf16, #tpu.memory_space<vmem>>, vector<4x16xbf16>,
    %c0_42 = arith.constant 0 : index
    %c0_43 = arith.constant 0 : index
    %c9 = arith.constant 9 : index
    %35 = vector.load %arg4[%c0_42, %c0_43, %c9] : memref<2x4x28xbf16, #tpu.memory_space<vmem>>, vector<1x4x16xbf16>
    %36 = vector.shape_cast %35 : vector<1x4x16xbf16> to vector<4x16xbf16>
    %c36 = arith.constant 36 : index
    %c0_44 = arith.constant 0 : index
    %37 = vector.load %arg5[%c36, %c0_44] : memref<52x32xbf16, #tpu.memory_space<vmem>>, vector<4x16xbf16>
    tpu.vector_store %arg5[%c36, %c0_44], %36 {strides = array<i32>} : memref<52x32xbf16, #tpu.memory_space<vmem>>, vector<4x16xbf16>,
    %c0_45 = arith.constant 0 : index
    %c0_46 = arith.constant 0 : index
    %c10 = arith.constant 10 : index
    %38 = vector.load %arg4[%c0_45, %c0_46, %c10] : memref<2x4x28xbf16, #tpu.memory_space<vmem>>, vector<1x4x16xbf16>
    %39 = vector.shape_cast %38 : vector<1x4x16xbf16> to vector<4x16xbf16>
    %c40 = arith.constant 40 : index
    %c0_47 = arith.constant 0 : index
    %40 = vector.load %arg5[%c40, %c0_47] : memref<52x32xbf16, #tpu.memory_space<vmem>>, vector<4x16xbf16>
    tpu.vector_store %arg5[%c40, %c0_47], %39 {strides = array<i32>} : memref<52x32xbf16, #tpu.memory_space<vmem>>, vector<4x16xbf16>,
    %c0_48 = arith.constant 0 : index
    %c0_49 = arith.constant 0 : index
    %c11 = arith.constant 11 : index
    %41 = vector.load %arg4[%c0_48, %c0_49, %c11] : memref<2x4x28xbf16, #tpu.memory_space<vmem>>, vector<1x4x16xbf16>
    %42 = vector.shape_cast %41 : vector<1x4x16xbf16> to vector<4x16xbf16>
    %c44 = arith.constant 44 : index
    %c0_50 = arith.constant 0 : index
    %43 = vector.load %arg5[%c44, %c0_50] : memref<52x32xbf16, #tpu.memory_space<vmem>>, vector<4x16xbf16>
    tpu.vector_store %arg5[%c44, %c0_50], %42 {strides = array<i32>} : memref<52x32xbf16, #tpu.memory_space<vmem>>, vector<4x16xbf16>,
    %c0_51 = arith.constant 0 : index
    %c0_52 = arith.constant 0 : index
    %c12_53 = arith.constant 12 : index
    %44 = vector.load %arg4[%c0_51, %c0_52, %c12_53] : memref<2x4x28xbf16, #tpu.memory_space<vmem>>, vector<1x4x16xbf16>
    %45 = vector.shape_cast %44 : vector<1x4x16xbf16> to vector<4x16xbf16>
    %c48 = arith.constant 48 : index
    %c0_54 = arith.constant 0 : index
    %46 = vector.load %arg5[%c48, %c0_54] : memref<52x32xbf16, #tpu.memory_space<vmem>>, vector<4x16xbf16>
    tpu.vector_store %arg5[%c48, %c0_54], %45 {strides = array<i32>} : memref<52x32xbf16, #tpu.memory_space<vmem>>, vector<4x16xbf16>,
    %c1_55 = arith.constant 1 : index
    %c0_56 = arith.constant 0 : index
    %c0_57 = arith.constant 0 : index
    %47 = vector.load %arg4[%c1_55, %c0_56, %c0_57] : memref<2x4x28xbf16, #tpu.memory_space<vmem>>, vector<1x4x16xbf16>
    %48 = vector.shape_cast %47 : vector<1x4x16xbf16> to vector<4x16xbf16>
    %c0_58 = arith.constant 0 : index
    %c16_59 = arith.constant 16 : index
    %49 = vector.load %arg5[%c0_58, %c16_59] : memref<52x32xbf16, #tpu.memory_space<vmem>>, vector<4x16xbf16>
    tpu.vector_store %arg5[%c0_58, %c16_59], %48 {strides = array<i32>} : memref<52x32xbf16, #tpu.memory_space<vmem>>, vector<4x16xbf16>,
    %c1_60 = arith.constant 1 : index
    %c0_61 = arith.constant 0 : index
    %c1_62 = arith.constant 1 : index
    %50 = vector.load %arg4[%c1_60, %c0_61, %c1_62] : memref<2x4x28xbf16, #tpu.memory_space<vmem>>, vector<1x4x16xbf16>
    %51 = vector.shape_cast %50 : vector<1x4x16xbf16> to vector<4x16xbf16>
    %c4_63 = arith.constant 4 : index
    %c16_64 = arith.constant 16 : index
    %52 = vector.load %arg5[%c4_63, %c16_64] : memref<52x32xbf16, #tpu.memory_space<vmem>>, vector<4x16xbf16>
    tpu.vector_store %arg5[%c4_63, %c16_64], %51 {strides = array<i32>} : memref<52x32xbf16, #tpu.memory_space<vmem>>, vector<4x16xbf16>,
    %c1_65 = arith.constant 1 : index
    %c0_66 = arith.constant 0 : index
    %c2_67 = arith.constant 2 : index
    %53 = vector.load %arg4[%c1_65, %c0_66, %c2_67] : memref<2x4x28xbf16, #tpu.memory_space<vmem>>, vector<1x4x16xbf16>
    %54 = vector.shape_cast %53 : vector<1x4x16xbf16> to vector<4x16xbf16>
    %c8_68 = arith.constant 8 : index
    %c16_69 = arith.constant 16 : index
    %55 = vector.load %arg5[%c8_68, %c16_69] : memref<52x32xbf16, #tpu.memory_space<vmem>>, vector<4x16xbf16>
    tpu.vector_store %arg5[%c8_68, %c16_69], %54 {strides = array<i32>} : memref<52x32xbf16, #tpu.memory_space<vmem>>, vector<4x16xbf16>,
    %c1_70 = arith.constant 1 : index
    %c0_71 = arith.constant 0 : index
    %c3_72 = arith.constant 3 : index
    %56 = vector.load %arg4[%c1_70, %c0_71, %c3_72] : memref<2x4x28xbf16, #tpu.memory_space<vmem>>, vector<1x4x16xbf16>
    %57 = vector.shape_cast %56 : vector<1x4x16xbf16> to vector<4x16xbf16>
    %c12_73 = arith.constant 12 : index
    %c16_74 = arith.constant 16 : index
    %58 = vector.load %arg5[%c12_73, %c16_74] : memref<52x32xbf16, #tpu.memory_space<vmem>>, vector<4x16xbf16>
    tpu.vector_store %arg5[%c12_73, %c16_74], %57 {strides = array<i32>} : memref<52x32xbf16, #tpu.memory_space<vmem>>, vector<4x16xbf16>,
    %c1_75 = arith.constant 1 : index
    %c0_76 = arith.constant 0 : index
    %c4_77 = arith.constant 4 : index
    %59 = vector.load %arg4[%c1_75, %c0_76, %c4_77] : memref<2x4x28xbf16, #tpu.memory_space<vmem>>, vector<1x4x16xbf16>
    %60 = vector.shape_cast %59 : vector<1x4x16xbf16> to vector<4x16xbf16>
    %c16_78 = arith.constant 16 : index
    %c16_79 = arith.constant 16 : index
    %61 = vector.load %arg5[%c16_78, %c16_79] : memref<52x32xbf16, #tpu.memory_space<vmem>>, vector<4x16xbf16>
    tpu.vector_store %arg5[%c16_78, %c16_79], %60 {strides = array<i32>} : memref<52x32xbf16, #tpu.memory_space<vmem>>, vector<4x16xbf16>,
    %c1_80 = arith.constant 1 : index
    %c0_81 = arith.constant 0 : index
    %c5_82 = arith.constant 5 : index
    %62 = vector.load %arg4[%c1_80, %c0_81, %c5_82] : memref<2x4x28xbf16, #tpu.memory_space<vmem>>, vector<1x4x16xbf16>
    %63 = vector.shape_cast %62 : vector<1x4x16xbf16> to vector<4x16xbf16>
    %c20_83 = arith.constant 20 : index
    %c16_84 = arith.constant 16 : index
    %64 = vector.load %arg5[%c20_83, %c16_84] : memref<52x32xbf16, #tpu.memory_space<vmem>>, vector<4x16xbf16>
    tpu.vector_store %arg5[%c20_83, %c16_84], %63 {strides = array<i32>} : memref<52x32xbf16, #tpu.memory_space<vmem>>, vector<4x16xbf16>,
    %c1_85 = arith.constant 1 : index
    %c0_86 = arith.constant 0 : index
    %c6_87 = arith.constant 6 : index
    %65 = vector.load %arg4[%c1_85, %c0_86, %c6_87] : memref<2x4x28xbf16, #tpu.memory_space<vmem>>, vector<1x4x16xbf16>
    %66 = vector.shape_cast %65 : vector<1x4x16xbf16> to vector<4x16xbf16>
    %c24_88 = arith.constant 24 : index
    %c16_89 = arith.constant 16 : index
    %67 = vector.load %arg5[%c24_88, %c16_89] : memref<52x32xbf16, #tpu.memory_space<vmem>>, vector<4x16xbf16>
    tpu.vector_store %arg5[%c24_88, %c16_89], %66 {strides = array<i32>} : memref<52x32xbf16, #tpu.memory_space<vmem>>, vector<4x16xbf16>,
    %c1_90 = arith.constant 1 : index
    %c0_91 = arith.constant 0 : index
    %c7_92 = arith.constant 7 : index
    %68 = vector.load %arg4[%c1_90, %c0_91, %c7_92] : memref<2x4x28xbf16, #tpu.memory_space<vmem>>, vector<1x4x16xbf16>
    %69 = vector.shape_cast %68 : vector<1x4x16xbf16> to vector<4x16xbf16>
    %c28_93 = arith.constant 28 : index
    %c16_94 = arith.constant 16 : index
    %70 = vector.load %arg5[%c28_93, %c16_94] : memref<52x32xbf16, #tpu.memory_space<vmem>>, vector<4x16xbf16>
    tpu.vector_store %arg5[%c28_93, %c16_94], %69 {strides = array<i32>} : memref<52x32xbf16, #tpu.memory_space<vmem>>, vector<4x16xbf16>,
    %c1_95 = arith.constant 1 : index
    %c0_96 = arith.constant 0 : index
    %c8_97 = arith.constant 8 : index
    %71 = vector.load %arg4[%c1_95, %c0_96, %c8_97] : memref<2x4x28xbf16, #tpu.memory_space<vmem>>, vector<1x4x16xbf16>
    %72 = vector.shape_cast %71 : vector<1x4x16xbf16> to vector<4x16xbf16>
    %c32_98 = arith.constant 32 : index
    %c16_99 = arith.constant 16 : index
    %73 = vector.load %arg5[%c32_98, %c16_99] : memref<52x32xbf16, #tpu.memory_space<vmem>>, vector<4x16xbf16>
    tpu.vector_store %arg5[%c32_98, %c16_99], %72 {strides = array<i32>} : memref<52x32xbf16, #tpu.memory_space<vmem>>, vector<4x16xbf16>,
    %c1_100 = arith.constant 1 : index
    %c0_101 = arith.constant 0 : index
    %c9_102 = arith.constant 9 : index
    %74 = vector.load %arg4[%c1_100, %c0_101, %c9_102] : memref<2x4x28xbf16, #tpu.memory_space<vmem>>, vector<1x4x16xbf16>
    %75 = vector.shape_cast %74 : vector<1x4x16xbf16> to vector<4x16xbf16>
    %c36_103 = arith.constant 36 : index
    %c16_104 = arith.constant 16 : index
    %76 = vector.load %arg5[%c36_103, %c16_104] : memref<52x32xbf16, #tpu.memory_space<vmem>>, vector<4x16xbf16>
    tpu.vector_store %arg5[%c36_103, %c16_104], %75 {strides = array<i32>} : memref<52x32xbf16, #tpu.memory_space<vmem>>, vector<4x16xbf16>,
    %c1_105 = arith.constant 1 : index
    %c0_106 = arith.constant 0 : index
    %c10_107 = arith.constant 10 : index
    %77 = vector.load %arg4[%c1_105, %c0_106, %c10_107] : memref<2x4x28xbf16, #tpu.memory_space<vmem>>, vector<1x4x16xbf16>
    %78 = vector.shape_cast %77 : vector<1x4x16xbf16> to vector<4x16xbf16>
    %c40_108 = arith.constant 40 : index
    %c16_109 = arith.constant 16 : index
    %79 = vector.load %arg5[%c40_108, %c16_109] : memref<52x32xbf16, #tpu.memory_space<vmem>>, vector<4x16xbf16>
    tpu.vector_store %arg5[%c40_108, %c16_109], %78 {strides = array<i32>} : memref<52x32xbf16, #tpu.memory_space<vmem>>, vector<4x16xbf16>,
    %c1_110 = arith.constant 1 : index
    %c0_111 = arith.constant 0 : index
    %c11_112 = arith.constant 11 : index
    %80 = vector.load %arg4[%c1_110, %c0_111, %c11_112] : memref<2x4x28xbf16, #tpu.memory_space<vmem>>, vector<1x4x16xbf16>
    %81 = vector.shape_cast %80 : vector<1x4x16xbf16> to vector<4x16xbf16>
    %c44_113 = arith.constant 44 : index
    %c16_114 = arith.constant 16 : index
    %82 = vector.load %arg5[%c44_113, %c16_114] : memref<52x32xbf16, #tpu.memory_space<vmem>>, vector<4x16xbf16>
    tpu.vector_store %arg5[%c44_113, %c16_114], %81 {strides = array<i32>} : memref<52x32xbf16, #tpu.memory_space<vmem>>, vector<4x16xbf16>,
    %c1_115 = arith.constant 1 : index
    %c0_116 = arith.constant 0 : index
    %c12_117 = arith.constant 12 : index
    %83 = vector.load %arg4[%c1_115, %c0_116, %c12_117] : memref<2x4x28xbf16, #tpu.memory_space<vmem>>, vector<1x4x16xbf16>
    %84 = vector.shape_cast %83 : vector<1x4x16xbf16> to vector<4x16xbf16>
    %c48_118 = arith.constant 48 : index
    %c16_119 = arith.constant 16 : index
    %85 = vector.load %arg5[%c48_118, %c16_119] : memref<52x32xbf16, #tpu.memory_space<vmem>>, vector<4x16xbf16>
    tpu.vector_store %arg5[%c48_118, %c16_119], %84 {strides = array<i32>} : memref<52x32xbf16, #tpu.memory_space<vmem>>, vector<4x16xbf16>,
    %c0_120 = arith.constant 0 : index
    %c0_121 = arith.constant 0 : index
    %86 = vector.load %arg5[%c0_120, %c0_121] : memref<52x32xbf16, #tpu.memory_space<vmem>>, vector<52x32xbf16>
    %cst_122 = arith.constant dense<0.000000e+00> : vector<8x32xf32>
    %87 = tpu.matmul %2, %86, %cst_122 {dimension_numbers = #tpu.dot_dimension_numbers<[1], [0], [0], [1], [0, 0, 1, 1], [], []>} : vector<8x52xbf16>, vector<52x32xbf16>, vector<8x32xf32> -> vector<8x32xf32>
    %88 = arith.subf %87, %3 : vector<8x32xf32>
    %cst_123 = arith.constant 5.000000e-01 : f32
    %89 = vector.broadcast %cst_123 : f32 to vector<8x32xf32>
    %90 = arith.mulf %88, %89 : vector<8x32xf32>
    %91 = arith.addf %3, %90 : vector<8x32xf32>
    %cst_124 = arith.constant 5.000000e-01 : f32
    %92 = vector.broadcast %cst_124 : f32 to vector<8x32xf32>
    %93 = arith.cmpf oge, %91, %92 : vector<8x32xf32>
    %cst_125 = arith.constant 1.000000e+00 : f32
    %cst_126 = arith.constant 0.000000e+00 : f32
    %94 = vector.broadcast %cst_125 : f32 to vector<8x32xf32>
    %95 = vector.broadcast %cst_126 : f32 to vector<8x32xf32>
    %96 = arith.select %93, %94, %95 : vector<8x32xi1>, vector<8x32xf32>
    %97 = arith.index_cast %c0_i32 : i32 to index
    %c0_127 = arith.constant 0 : index
    %c0_128 = arith.constant 0 : index
    %98 = vector.load %arg3[%97, %c0_127, %c0_128] : memref<4x8x32xf32, #tpu.memory_space<vmem>>, vector<1x8x32xf32>
    %99 = vector.shape_cast %98 : vector<1x8x32xf32> to vector<8x32xf32>
    %100 = vector.shape_cast %96 : vector<8x32xf32> to vector<1x8x32xf32>
    tpu.vector_store %arg3[%97, %c0_127, %c0_128], %100 {strides = array<i32>} : memref<4x8x32xf32, #tpu.memory_space<vmem>>, vector<1x8x32xf32>,
    %cst_129 = arith.constant 0.000000e+00 : f32
    %101 = vector.broadcast %cst_129 : f32 to vector<8x32xf32>
    %102 = arith.select %93, %101, %91 : vector<8x32xi1>, vector<8x32xf32>
    %c1_i32 = arith.constant 1 : i32
    %103 = arith.index_cast %c1_i32 : i32 to index
    %c0_130 = arith.constant 0 : index
    %c0_131 = arith.constant 0 : index
    %c0_132 = arith.constant 0 : index
    %104 = vector.load %arg2[%103, %c0_130, %c0_131, %c0_132] : memref<4x2x4x16xbf16, #tpu.memory_space<vmem>>, vector<1x2x4x16xbf16>
    %105 = vector.shape_cast %104 : vector<1x2x4x16xbf16> to vector<2x4x16xbf16>
    %c0_133 = arith.constant 0 : index
    %c0_134 = arith.constant 0 : index
    %c6_135 = arith.constant 6 : index
    %106 = vector.load %arg4[%c0_133, %c0_134, %c6_135] : memref<2x4x28xbf16, #tpu.memory_space<vmem>>, vector<2x4x16xbf16>
    tpu.vector_store %arg4[%c0_133, %c0_134, %c6_135], %105 {strides = array<i32>} : memref<2x4x28xbf16, #tpu.memory_space<vmem>>, vector<2x4x16xbf16>,
    %c0_136 = arith.constant 0 : index
    %c0_137 = arith.constant 0 : index
    %c0_138 = arith.constant 0 : index
    %107 = vector.load %arg4[%c0_136, %c0_137, %c0_138] : memref<2x4x28xbf16, #tpu.memory_space<vmem>>, vector<1x4x16xbf16>
    %108 = vector.shape_cast %107 : vector<1x4x16xbf16> to vector<4x16xbf16>
    %c0_139 = arith.constant 0 : index
    %c0_140 = arith.constant 0 : index
    %109 = vector.load %arg5[%c0_139, %c0_140] : memref<52x32xbf16, #tpu.memory_space<vmem>>, vector<4x16xbf16>
    tpu.vector_store %arg5[%c0_139, %c0_140], %108 {strides = array<i32>} : memref<52x32xbf16, #tpu.memory_space<vmem>>, vector<4x16xbf16>,
    %c0_141 = arith.constant 0 : index
    %c0_142 = arith.constant 0 : index
    %c1_143 = arith.constant 1 : index
    %110 = vector.load %arg4[%c0_141, %c0_142, %c1_143] : memref<2x4x28xbf16, #tpu.memory_space<vmem>>, vector<1x4x16xbf16>
    %111 = vector.shape_cast %110 : vector<1x4x16xbf16> to vector<4x16xbf16>
    %c4_144 = arith.constant 4 : index
    %c0_145 = arith.constant 0 : index
    %112 = vector.load %arg5[%c4_144, %c0_145] : memref<52x32xbf16, #tpu.memory_space<vmem>>, vector<4x16xbf16>
    tpu.vector_store %arg5[%c4_144, %c0_145], %111 {strides = array<i32>} : memref<52x32xbf16, #tpu.memory_space<vmem>>, vector<4x16xbf16>,
    %c0_146 = arith.constant 0 : index
    %c0_147 = arith.constant 0 : index
    %c2_148 = arith.constant 2 : index
    %113 = vector.load %arg4[%c0_146, %c0_147, %c2_148] : memref<2x4x28xbf16, #tpu.memory_space<vmem>>, vector<1x4x16xbf16>
    %114 = vector.shape_cast %113 : vector<1x4x16xbf16> to vector<4x16xbf16>
    %c8_149 = arith.constant 8 : index
    %c0_150 = arith.constant 0 : index
    %115 = vector.load %arg5[%c8_149, %c0_150] : memref<52x32xbf16, #tpu.memory_space<vmem>>, vector<4x16xbf16>
    tpu.vector_store %arg5[%c8_149, %c0_150], %114 {strides = array<i32>} : memref<52x32xbf16, #tpu.memory_space<vmem>>, vector<4x16xbf16>,
    %c0_151 = arith.constant 0 : index
    %c0_152 = arith.constant 0 : index
    %c3_153 = arith.constant 3 : index
    %116 = vector.load %arg4[%c0_151, %c0_152, %c3_153] : memref<2x4x28xbf16, #tpu.memory_space<vmem>>, vector<1x4x16xbf16>
    %117 = vector.shape_cast %116 : vector<1x4x16xbf16> to vector<4x16xbf16>
    %c12_154 = arith.constant 12 : index
    %c0_155 = arith.constant 0 : index
    %118 = vector.load %arg5[%c12_154, %c0_155] : memref<52x32xbf16, #tpu.memory_space<vmem>>, vector<4x16xbf16>
    tpu.vector_store %arg5[%c12_154, %c0_155], %117 {strides = array<i32>} : memref<52x32xbf16, #tpu.memory_space<vmem>>, vector<4x16xbf16>,
    %c0_156 = arith.constant 0 : index
    %c0_157 = arith.constant 0 : index
    %c4_158 = arith.constant 4 : index
    %119 = vector.load %arg4[%c0_156, %c0_157, %c4_158] : memref<2x4x28xbf16, #tpu.memory_space<vmem>>, vector<1x4x16xbf16>
    %120 = vector.shape_cast %119 : vector<1x4x16xbf16> to vector<4x16xbf16>
    %c16_159 = arith.constant 16 : index
    %c0_160 = arith.constant 0 : index
    %121 = vector.load %arg5[%c16_159, %c0_160] : memref<52x32xbf16, #tpu.memory_space<vmem>>, vector<4x16xbf16>
    tpu.vector_store %arg5[%c16_159, %c0_160], %120 {strides = array<i32>} : memref<52x32xbf16, #tpu.memory_space<vmem>>, vector<4x16xbf16>,
    %c0_161 = arith.constant 0 : index
    %c0_162 = arith.constant 0 : index
    %c5_163 = arith.constant 5 : index
    %122 = vector.load %arg4[%c0_161, %c0_162, %c5_163] : memref<2x4x28xbf16, #tpu.memory_space<vmem>>, vector<1x4x16xbf16>
    %123 = vector.shape_cast %122 : vector<1x4x16xbf16> to vector<4x16xbf16>
    %c20_164 = arith.constant 20 : index
    %c0_165 = arith.constant 0 : index
    %124 = vector.load %arg5[%c20_164, %c0_165] : memref<52x32xbf16, #tpu.memory_space<vmem>>, vector<4x16xbf16>
    tpu.vector_store %arg5[%c20_164, %c0_165], %123 {strides = array<i32>} : memref<52x32xbf16, #tpu.memory_space<vmem>>, vector<4x16xbf16>,
    %c0_166 = arith.constant 0 : index
    %c0_167 = arith.constant 0 : index
    %c6_168 = arith.constant 6 : index
    %125 = vector.load %arg4[%c0_166, %c0_167, %c6_168] : memref<2x4x28xbf16, #tpu.memory_space<vmem>>, vector<1x4x16xbf16>
    %126 = vector.shape_cast %125 : vector<1x4x16xbf16> to vector<4x16xbf16>
    %c24_169 = arith.constant 24 : index
    %c0_170 = arith.constant 0 : index
    %127 = vector.load %arg5[%c24_169, %c0_170] : memref<52x32xbf16, #tpu.memory_space<vmem>>, vector<4x16xbf16>
    tpu.vector_store %arg5[%c24_169, %c0_170], %126 {strides = array<i32>} : memref<52x32xbf16, #tpu.memory_space<vmem>>, vector<4x16xbf16>,
    %c0_171 = arith.constant 0 : index
    %c0_172 = arith.constant 0 : index
    %c7_173 = arith.constant 7 : index
    %128 = vector.load %arg4[%c0_171, %c0_172, %c7_173] : memref<2x4x28xbf16, #tpu.memory_space<vmem>>, vector<1x4x16xbf16>
    %129 = vector.shape_cast %128 : vector<1x4x16xbf16> to vector<4x16xbf16>
    %c28_174 = arith.constant 28 : index
    %c0_175 = arith.constant 0 : index
    %130 = vector.load %arg5[%c28_174, %c0_175] : memref<52x32xbf16, #tpu.memory_space<vmem>>, vector<4x16xbf16>
    tpu.vector_store %arg5[%c28_174, %c0_175], %129 {strides = array<i32>} : memref<52x32xbf16, #tpu.memory_space<vmem>>, vector<4x16xbf16>,
    %c0_176 = arith.constant 0 : index
    %c0_177 = arith.constant 0 : index
    %c8_178 = arith.constant 8 : index
    %131 = vector.load %arg4[%c0_176, %c0_177, %c8_178] : memref<2x4x28xbf16, #tpu.memory_space<vmem>>, vector<1x4x16xbf16>
    %132 = vector.shape_cast %131 : vector<1x4x16xbf16> to vector<4x16xbf16>
    %c32_179 = arith.constant 32 : index
    %c0_180 = arith.constant 0 : index
    %133 = vector.load %arg5[%c32_179, %c0_180] : memref<52x32xbf16, #tpu.memory_space<vmem>>, vector<4x16xbf16>
    tpu.vector_store %arg5[%c32_179, %c0_180], %132 {strides = array<i32>} : memref<52x32xbf16, #tpu.memory_space<vmem>>, vector<4x16xbf16>,
    %c0_181 = arith.constant 0 : index
    %c0_182 = arith.constant 0 : index
    %c9_183 = arith.constant 9 : index
    %134 = vector.load %arg4[%c0_181, %c0_182, %c9_183] : memref<2x4x28xbf16, #tpu.memory_space<vmem>>, vector<1x4x16xbf16>
    %135 = vector.shape_cast %134 : vector<1x4x16xbf16> to vector<4x16xbf16>
    %c36_184 = arith.constant 36 : index
    %c0_185 = arith.constant 0 : index
    %136 = vector.load %arg5[%c36_184, %c0_185] : memref<52x32xbf16, #tpu.memory_space<vmem>>, vector<4x16xbf16>
    tpu.vector_store %arg5[%c36_184, %c0_185], %135 {strides = array<i32>} : memref<52x32xbf16, #tpu.memory_space<vmem>>, vector<4x16xbf16>,
    %c0_186 = arith.constant 0 : index
    %c0_187 = arith.constant 0 : index
    %c10_188 = arith.constant 10 : index
    %137 = vector.load %arg4[%c0_186, %c0_187, %c10_188] : memref<2x4x28xbf16, #tpu.memory_space<vmem>>, vector<1x4x16xbf16>
    %138 = vector.shape_cast %137 : vector<1x4x16xbf16> to vector<4x16xbf16>
    %c40_189 = arith.constant 40 : index
    %c0_190 = arith.constant 0 : index
    %139 = vector.load %arg5[%c40_189, %c0_190] : memref<52x32xbf16, #tpu.memory_space<vmem>>, vector<4x16xbf16>
    tpu.vector_store %arg5[%c40_189, %c0_190], %138 {strides = array<i32>} : memref<52x32xbf16, #tpu.memory_space<vmem>>, vector<4x16xbf16>,
    %c0_191 = arith.constant 0 : index
    %c0_192 = arith.constant 0 : index
    %c11_193 = arith.constant 11 : index
    %140 = vector.load %arg4[%c0_191, %c0_192, %c11_193] : memref<2x4x28xbf16, #tpu.memory_space<vmem>>, vector<1x4x16xbf16>
    %141 = vector.shape_cast %140 : vector<1x4x16xbf16> to vector<4x16xbf16>
    %c44_194 = arith.constant 44 : index
    %c0_195 = arith.constant 0 : index
    %142 = vector.load %arg5[%c44_194, %c0_195] : memref<52x32xbf16, #tpu.memory_space<vmem>>, vector<4x16xbf16>
    tpu.vector_store %arg5[%c44_194, %c0_195], %141 {strides = array<i32>} : memref<52x32xbf16, #tpu.memory_space<vmem>>, vector<4x16xbf16>,
    %c0_196 = arith.constant 0 : index
    %c0_197 = arith.constant 0 : index
    %c12_198 = arith.constant 12 : index
    %143 = vector.load %arg4[%c0_196, %c0_197, %c12_198] : memref<2x4x28xbf16, #tpu.memory_space<vmem>>, vector<1x4x16xbf16>
    %144 = vector.shape_cast %143 : vector<1x4x16xbf16> to vector<4x16xbf16>
    %c48_199 = arith.constant 48 : index
    %c0_200 = arith.constant 0 : index
    %145 = vector.load %arg5[%c48_199, %c0_200] : memref<52x32xbf16, #tpu.memory_space<vmem>>, vector<4x16xbf16>
    tpu.vector_store %arg5[%c48_199, %c0_200], %144 {strides = array<i32>} : memref<52x32xbf16, #tpu.memory_space<vmem>>, vector<4x16xbf16>,
    %c1_201 = arith.constant 1 : index
    %c0_202 = arith.constant 0 : index
    %c0_203 = arith.constant 0 : index
    %146 = vector.load %arg4[%c1_201, %c0_202, %c0_203] : memref<2x4x28xbf16, #tpu.memory_space<vmem>>, vector<1x4x16xbf16>
    %147 = vector.shape_cast %146 : vector<1x4x16xbf16> to vector<4x16xbf16>
    %c0_204 = arith.constant 0 : index
    %c16_205 = arith.constant 16 : index
    %148 = vector.load %arg5[%c0_204, %c16_205] : memref<52x32xbf16, #tpu.memory_space<vmem>>, vector<4x16xbf16>
    tpu.vector_store %arg5[%c0_204, %c16_205], %147 {strides = array<i32>} : memref<52x32xbf16, #tpu.memory_space<vmem>>, vector<4x16xbf16>,
    %c1_206 = arith.constant 1 : index
    %c0_207 = arith.constant 0 : index
    %c1_208 = arith.constant 1 : index
    %149 = vector.load %arg4[%c1_206, %c0_207, %c1_208] : memref<2x4x28xbf16, #tpu.memory_space<vmem>>, vector<1x4x16xbf16>
    %150 = vector.shape_cast %149 : vector<1x4x16xbf16> to vector<4x16xbf16>
    %c4_209 = arith.constant 4 : index
    %c16_210 = arith.constant 16 : index
    %151 = vector.load %arg5[%c4_209, %c16_210] : memref<52x32xbf16, #tpu.memory_space<vmem>>, vector<4x16xbf16>
    tpu.vector_store %arg5[%c4_209, %c16_210], %150 {strides = array<i32>} : memref<52x32xbf16, #tpu.memory_space<vmem>>, vector<4x16xbf16>,
    %c1_211 = arith.constant 1 : index
    %c0_212 = arith.constant 0 : index
    %c2_213 = arith.constant 2 : index
    %152 = vector.load %arg4[%c1_211, %c0_212, %c2_213] : memref<2x4x28xbf16, #tpu.memory_space<vmem>>, vector<1x4x16xbf16>
    %153 = vector.shape_cast %152 : vector<1x4x16xbf16> to vector<4x16xbf16>
    %c8_214 = arith.constant 8 : index
    %c16_215 = arith.constant 16 : index
    %154 = vector.load %arg5[%c8_214, %c16_215] : memref<52x32xbf16, #tpu.memory_space<vmem>>, vector<4x16xbf16>
    tpu.vector_store %arg5[%c8_214, %c16_215], %153 {strides = array<i32>} : memref<52x32xbf16, #tpu.memory_space<vmem>>, vector<4x16xbf16>,
    %c1_216 = arith.constant 1 : index
    %c0_217 = arith.constant 0 : index
    %c3_218 = arith.constant 3 : index
    %155 = vector.load %arg4[%c1_216, %c0_217, %c3_218] : memref<2x4x28xbf16, #tpu.memory_space<vmem>>, vector<1x4x16xbf16>
    %156 = vector.shape_cast %155 : vector<1x4x16xbf16> to vector<4x16xbf16>
    %c12_219 = arith.constant 12 : index
    %c16_220 = arith.constant 16 : index
    %157 = vector.load %arg5[%c12_219, %c16_220] : memref<52x32xbf16, #tpu.memory_space<vmem>>, vector<4x16xbf16>
    tpu.vector_store %arg5[%c12_219, %c16_220], %156 {strides = array<i32>} : memref<52x32xbf16, #tpu.memory_space<vmem>>, vector<4x16xbf16>,
    %c1_221 = arith.constant 1 : index
    %c0_222 = arith.constant 0 : index
    %c4_223 = arith.constant 4 : index
    %158 = vector.load %arg4[%c1_221, %c0_222, %c4_223] : memref<2x4x28xbf16, #tpu.memory_space<vmem>>, vector<1x4x16xbf16>
    %159 = vector.shape_cast %158 : vector<1x4x16xbf16> to vector<4x16xbf16>
    %c16_224 = arith.constant 16 : index
    %c16_225 = arith.constant 16 : index
    %160 = vector.load %arg5[%c16_224, %c16_225] : memref<52x32xbf16, #tpu.memory_space<vmem>>, vector<4x16xbf16>
    tpu.vector_store %arg5[%c16_224, %c16_225], %159 {strides = array<i32>} : memref<52x32xbf16, #tpu.memory_space<vmem>>, vector<4x16xbf16>,
    %c1_226 = arith.constant 1 : index
    %c0_227 = arith.constant 0 : index
    %c5_228 = arith.constant 5 : index
    %161 = vector.load %arg4[%c1_226, %c0_227, %c5_228] : memref<2x4x28xbf16, #tpu.memory_space<vmem>>, vector<1x4x16xbf16>
    %162 = vector.shape_cast %161 : vector<1x4x16xbf16> to vector<4x16xbf16>
    %c20_229 = arith.constant 20 : index
    %c16_230 = arith.constant 16 : index
    %163 = vector.load %arg5[%c20_229, %c16_230] : memref<52x32xbf16, #tpu.memory_space<vmem>>, vector<4x16xbf16>
    tpu.vector_store %arg5[%c20_229, %c16_230], %162 {strides = array<i32>} : memref<52x32xbf16, #tpu.memory_space<vmem>>, vector<4x16xbf16>,
    %c1_231 = arith.constant 1 : index
    %c0_232 = arith.constant 0 : index
    %c6_233 = arith.constant 6 : index
    %164 = vector.load %arg4[%c1_231, %c0_232, %c6_233] : memref<2x4x28xbf16, #tpu.memory_space<vmem>>, vector<1x4x16xbf16>
    %165 = vector.shape_cast %164 : vector<1x4x16xbf16> to vector<4x16xbf16>
    %c24_234 = arith.constant 24 : index
    %c16_235 = arith.constant 16 : index
    %166 = vector.load %arg5[%c24_234, %c16_235] : memref<52x32xbf16, #tpu.memory_space<vmem>>, vector<4x16xbf16>
    tpu.vector_store %arg5[%c24_234, %c16_235], %165 {strides = array<i32>} : memref<52x32xbf16, #tpu.memory_space<vmem>>, vector<4x16xbf16>,
    %c1_236 = arith.constant 1 : index
    %c0_237 = arith.constant 0 : index
    %c7_238 = arith.constant 7 : index
    %167 = vector.load %arg4[%c1_236, %c0_237, %c7_238] : memref<2x4x28xbf16, #tpu.memory_space<vmem>>, vector<1x4x16xbf16>
    %168 = vector.shape_cast %167 : vector<1x4x16xbf16> to vector<4x16xbf16>
    %c28_239 = arith.constant 28 : index
    %c16_240 = arith.constant 16 : index
    %169 = vector.load %arg5[%c28_239, %c16_240] : memref<52x32xbf16, #tpu.memory_space<vmem>>, vector<4x16xbf16>
    tpu.vector_store %arg5[%c28_239, %c16_240], %168 {strides = array<i32>} : memref<52x32xbf16, #tpu.memory_space<vmem>>, vector<4x16xbf16>,
    %c1_241 = arith.constant 1 : index
    %c0_242 = arith.constant 0 : index
    %c8_243 = arith.constant 8 : index
    %170 = vector.load %arg4[%c1_241, %c0_242, %c8_243] : memref<2x4x28xbf16, #tpu.memory_space<vmem>>, vector<1x4x16xbf16>
    %171 = vector.shape_cast %170 : vector<1x4x16xbf16> to vector<4x16xbf16>
    %c32_244 = arith.constant 32 : index
    %c16_245 = arith.constant 16 : index
    %172 = vector.load %arg5[%c32_244, %c16_245] : memref<52x32xbf16, #tpu.memory_space<vmem>>, vector<4x16xbf16>
    tpu.vector_store %arg5[%c32_244, %c16_245], %171 {strides = array<i32>} : memref<52x32xbf16, #tpu.memory_space<vmem>>, vector<4x16xbf16>,
    %c1_246 = arith.constant 1 : index
    %c0_247 = arith.constant 0 : index
    %c9_248 = arith.constant 9 : index
    %173 = vector.load %arg4[%c1_246, %c0_247, %c9_248] : memref<2x4x28xbf16, #tpu.memory_space<vmem>>, vector<1x4x16xbf16>
    %174 = vector.shape_cast %173 : vector<1x4x16xbf16> to vector<4x16xbf16>
    %c36_249 = arith.constant 36 : index
    %c16_250 = arith.constant 16 : index
    %175 = vector.load %arg5[%c36_249, %c16_250] : memref<52x32xbf16, #tpu.memory_space<vmem>>, vector<4x16xbf16>
    tpu.vector_store %arg5[%c36_249, %c16_250], %174 {strides = array<i32>} : memref<52x32xbf16, #tpu.memory_space<vmem>>, vector<4x16xbf16>,
    %c1_251 = arith.constant 1 : index
    %c0_252 = arith.constant 0 : index
    %c10_253 = arith.constant 10 : index
    %176 = vector.load %arg4[%c1_251, %c0_252, %c10_253] : memref<2x4x28xbf16, #tpu.memory_space<vmem>>, vector<1x4x16xbf16>
    %177 = vector.shape_cast %176 : vector<1x4x16xbf16> to vector<4x16xbf16>
    %c40_254 = arith.constant 40 : index
    %c16_255 = arith.constant 16 : index
    %178 = vector.load %arg5[%c40_254, %c16_255] : memref<52x32xbf16, #tpu.memory_space<vmem>>, vector<4x16xbf16>
    tpu.vector_store %arg5[%c40_254, %c16_255], %177 {strides = array<i32>} : memref<52x32xbf16, #tpu.memory_space<vmem>>, vector<4x16xbf16>,
    %c1_256 = arith.constant 1 : index
    %c0_257 = arith.constant 0 : index
    %c11_258 = arith.constant 11 : index
    %179 = vector.load %arg4[%c1_256, %c0_257, %c11_258] : memref<2x4x28xbf16, #tpu.memory_space<vmem>>, vector<1x4x16xbf16>
    %180 = vector.shape_cast %179 : vector<1x4x16xbf16> to vector<4x16xbf16>
    %c44_259 = arith.constant 44 : index
    %c16_260 = arith.constant 16 : index
    %181 = vector.load %arg5[%c44_259, %c16_260] : memref<52x32xbf16, #tpu.memory_space<vmem>>, vector<4x16xbf16>
    tpu.vector_store %arg5[%c44_259, %c16_260], %180 {strides = array<i32>} : memref<52x32xbf16, #tpu.memory_space<vmem>>, vector<4x16xbf16>,
    %c1_261 = arith.constant 1 : index
    %c0_262 = arith.constant 0 : index
    %c12_263 = arith.constant 12 : index
    %182 = vector.load %arg4[%c1_261, %c0_262, %c12_263] : memref<2x4x28xbf16, #tpu.memory_space<vmem>>, vector<1x4x16xbf16>
    %183 = vector.shape_cast %182 : vector<1x4x16xbf16> to vector<4x16xbf16>
    %c48_264 = arith.constant 48 : index
    %c16_265 = arith.constant 16 : index
    %184 = vector.load %arg5[%c48_264, %c16_265] : memref<52x32xbf16, #tpu.memory_space<vmem>>, vector<4x16xbf16>
    tpu.vector_store %arg5[%c48_264, %c16_265], %183 {strides = array<i32>} : memref<52x32xbf16, #tpu.memory_space<vmem>>, vector<4x16xbf16>,
    %c0_266 = arith.constant 0 : index
    %c0_267 = arith.constant 0 : index
    %185 = vector.load %arg5[%c0_266, %c0_267] : memref<52x32xbf16, #tpu.memory_space<vmem>>, vector<52x32xbf16>
    %cst_268 = arith.constant dense<0.000000e+00> : vector<8x32xf32>
    %186 = tpu.matmul %2, %185, %cst_268 {dimension_numbers = #tpu.dot_dimension_numbers<[1], [0], [0], [1], [0, 0, 1, 1], [], []>} : vector<8x52xbf16>, vector<52x32xbf16>, vector<8x32xf32> -> vector<8x32xf32>
    %187 = arith.subf %186, %102 : vector<8x32xf32>
    %cst_269 = arith.constant 5.000000e-01 : f32
    %188 = vector.broadcast %cst_269 : f32 to vector<8x32xf32>
    %189 = arith.mulf %187, %188 : vector<8x32xf32>
    %190 = arith.addf %102, %189 : vector<8x32xf32>
    %cst_270 = arith.constant 5.000000e-01 : f32
    %191 = vector.broadcast %cst_270 : f32 to vector<8x32xf32>
    %192 = arith.cmpf oge, %190, %191 : vector<8x32xf32>
    %cst_271 = arith.constant 1.000000e+00 : f32
    %cst_272 = arith.constant 0.000000e+00 : f32
    %193 = vector.broadcast %cst_271 : f32 to vector<8x32xf32>
    %194 = vector.broadcast %cst_272 : f32 to vector<8x32xf32>
    %195 = arith.select %192, %193, %194 : vector<8x32xi1>, vector<8x32xf32>
    %196 = arith.index_cast %c1_i32 : i32 to index
    %c0_273 = arith.constant 0 : index
    %c0_274 = arith.constant 0 : index
    %197 = vector.load %arg3[%196, %c0_273, %c0_274] : memref<4x8x32xf32, #tpu.memory_space<vmem>>, vector<1x8x32xf32>
    %198 = vector.shape_cast %197 : vector<1x8x32xf32> to vector<8x32xf32>
    %199 = vector.shape_cast %195 : vector<8x32xf32> to vector<1x8x32xf32>
    tpu.vector_store %arg3[%196, %c0_273, %c0_274], %199 {strides = array<i32>} : memref<4x8x32xf32, #tpu.memory_space<vmem>>, vector<1x8x32xf32>,
    %cst_275 = arith.constant 0.000000e+00 : f32
    %200 = vector.broadcast %cst_275 : f32 to vector<8x32xf32>
    %201 = arith.select %192, %200, %190 : vector<8x32xi1>, vector<8x32xf32>
    %c2_i32 = arith.constant 2 : i32
    %202 = arith.index_cast %c2_i32 : i32 to index
    %c0_276 = arith.constant 0 : index
    %c0_277 = arith.constant 0 : index
    %c0_278 = arith.constant 0 : index
    %203 = vector.load %arg2[%202, %c0_276, %c0_277, %c0_278] : memref<4x2x4x16xbf16, #tpu.memory_space<vmem>>, vector<1x2x4x16xbf16>
    %204 = vector.shape_cast %203 : vector<1x2x4x16xbf16> to vector<2x4x16xbf16>
    %c0_279 = arith.constant 0 : index
    %c0_280 = arith.constant 0 : index
    %c6_281 = arith.constant 6 : index
    %205 = vector.load %arg4[%c0_279, %c0_280, %c6_281] : memref<2x4x28xbf16, #tpu.memory_space<vmem>>, vector<2x4x16xbf16>
    tpu.vector_store %arg4[%c0_279, %c0_280, %c6_281], %204 {strides = array<i32>} : memref<2x4x28xbf16, #tpu.memory_space<vmem>>, vector<2x4x16xbf16>,
    %c0_282 = arith.constant 0 : index
    %c0_283 = arith.constant 0 : index
    %c0_284 = arith.constant 0 : index
    %206 = vector.load %arg4[%c0_282, %c0_283, %c0_284] : memref<2x4x28xbf16, #tpu.memory_space<vmem>>, vector<1x4x16xbf16>
    %207 = vector.shape_cast %206 : vector<1x4x16xbf16> to vector<4x16xbf16>
    %c0_285 = arith.constant 0 : index
    %c0_286 = arith.constant 0 : index
    %208 = vector.load %arg5[%c0_285, %c0_286] : memref<52x32xbf16, #tpu.memory_space<vmem>>, vector<4x16xbf16>
    tpu.vector_store %arg5[%c0_285, %c0_286], %207 {strides = array<i32>} : memref<52x32xbf16, #tpu.memory_space<vmem>>, vector<4x16xbf16>,
    %c0_287 = arith.constant 0 : index
    %c0_288 = arith.constant 0 : index
    %c1_289 = arith.constant 1 : index
    %209 = vector.load %arg4[%c0_287, %c0_288, %c1_289] : memref<2x4x28xbf16, #tpu.memory_space<vmem>>, vector<1x4x16xbf16>
    %210 = vector.shape_cast %209 : vector<1x4x16xbf16> to vector<4x16xbf16>
    %c4_290 = arith.constant 4 : index
    %c0_291 = arith.constant 0 : index
    %211 = vector.load %arg5[%c4_290, %c0_291] : memref<52x32xbf16, #tpu.memory_space<vmem>>, vector<4x16xbf16>
    tpu.vector_store %arg5[%c4_290, %c0_291], %210 {strides = array<i32>} : memref<52x32xbf16, #tpu.memory_space<vmem>>, vector<4x16xbf16>,
    %c0_292 = arith.constant 0 : index
    %c0_293 = arith.constant 0 : index
    %c2_294 = arith.constant 2 : index
    %212 = vector.load %arg4[%c0_292, %c0_293, %c2_294] : memref<2x4x28xbf16, #tpu.memory_space<vmem>>, vector<1x4x16xbf16>
    %213 = vector.shape_cast %212 : vector<1x4x16xbf16> to vector<4x16xbf16>
    %c8_295 = arith.constant 8 : index
    %c0_296 = arith.constant 0 : index
    %214 = vector.load %arg5[%c8_295, %c0_296] : memref<52x32xbf16, #tpu.memory_space<vmem>>, vector<4x16xbf16>
    tpu.vector_store %arg5[%c8_295, %c0_296], %213 {strides = array<i32>} : memref<52x32xbf16, #tpu.memory_space<vmem>>, vector<4x16xbf16>,
    %c0_297 = arith.constant 0 : index
    %c0_298 = arith.constant 0 : index
    %c3_299 = arith.constant 3 : index
    %215 = vector.load %arg4[%c0_297, %c0_298, %c3_299] : memref<2x4x28xbf16, #tpu.memory_space<vmem>>, vector<1x4x16xbf16>
    %216 = vector.shape_cast %215 : vector<1x4x16xbf16> to vector<4x16xbf16>
    %c12_300 = arith.constant 12 : index
    %c0_301 = arith.constant 0 : index
    %217 = vector.load %arg5[%c12_300, %c0_301] : memref<52x32xbf16, #tpu.memory_space<vmem>>, vector<4x16xbf16>
    tpu.vector_store %arg5[%c12_300, %c0_301], %216 {strides = array<i32>} : memref<52x32xbf16, #tpu.memory_space<vmem>>, vector<4x16xbf16>,
    %c0_302 = arith.constant 0 : index
    %c0_303 = arith.constant 0 : index
    %c4_304 = arith.constant 4 : index
    %218 = vector.load %arg4[%c0_302, %c0_303, %c4_304] : memref<2x4x28xbf16, #tpu.memory_space<vmem>>, vector<1x4x16xbf16>
    %219 = vector.shape_cast %218 : vector<1x4x16xbf16> to vector<4x16xbf16>
    %c16_305 = arith.constant 16 : index
    %c0_306 = arith.constant 0 : index
    %220 = vector.load %arg5[%c16_305, %c0_306] : memref<52x32xbf16, #tpu.memory_space<vmem>>, vector<4x16xbf16>
    tpu.vector_store %arg5[%c16_305, %c0_306], %219 {strides = array<i32>} : memref<52x32xbf16, #tpu.memory_space<vmem>>, vector<4x16xbf16>,
    %c0_307 = arith.constant 0 : index
    %c0_308 = arith.constant 0 : index
    %c5_309 = arith.constant 5 : index
    %221 = vector.load %arg4[%c0_307, %c0_308, %c5_309] : memref<2x4x28xbf16, #tpu.memory_space<vmem>>, vector<1x4x16xbf16>
    %222 = vector.shape_cast %221 : vector<1x4x16xbf16> to vector<4x16xbf16>
    %c20_310 = arith.constant 20 : index
    %c0_311 = arith.constant 0 : index
    %223 = vector.load %arg5[%c20_310, %c0_311] : memref<52x32xbf16, #tpu.memory_space<vmem>>, vector<4x16xbf16>
    tpu.vector_store %arg5[%c20_310, %c0_311], %222 {strides = array<i32>} : memref<52x32xbf16, #tpu.memory_space<vmem>>, vector<4x16xbf16>,
    %c0_312 = arith.constant 0 : index
    %c0_313 = arith.constant 0 : index
    %c6_314 = arith.constant 6 : index
    %224 = vector.load %arg4[%c0_312, %c0_313, %c6_314] : memref<2x4x28xbf16, #tpu.memory_space<vmem>>, vector<1x4x16xbf16>
    %225 = vector.shape_cast %224 : vector<1x4x16xbf16> to vector<4x16xbf16>
    %c24_315 = arith.constant 24 : index
    %c0_316 = arith.constant 0 : index
    %226 = vector.load %arg5[%c24_315, %c0_316] : memref<52x32xbf16, #tpu.memory_space<vmem>>, vector<4x16xbf16>
    tpu.vector_store %arg5[%c24_315, %c0_316], %225 {strides = array<i32>} : memref<52x32xbf16, #tpu.memory_space<vmem>>, vector<4x16xbf16>,
    %c0_317 = arith.constant 0 : index
    %c0_318 = arith.constant 0 : index
    %c7_319 = arith.constant 7 : index
    %227 = vector.load %arg4[%c0_317, %c0_318, %c7_319] : memref<2x4x28xbf16, #tpu.memory_space<vmem>>, vector<1x4x16xbf16>
    %228 = vector.shape_cast %227 : vector<1x4x16xbf16> to vector<4x16xbf16>
    %c28_320 = arith.constant 28 : index
    %c0_321 = arith.constant 0 : index
    %229 = vector.load %arg5[%c28_320, %c0_321] : memref<52x32xbf16, #tpu.memory_space<vmem>>, vector<4x16xbf16>
    tpu.vector_store %arg5[%c28_320, %c0_321], %228 {strides = array<i32>} : memref<52x32xbf16, #tpu.memory_space<vmem>>, vector<4x16xbf16>,
    %c0_322 = arith.constant 0 : index
    %c0_323 = arith.constant 0 : index
    %c8_324 = arith.constant 8 : index
    %230 = vector.load %arg4[%c0_322, %c0_323, %c8_324] : memref<2x4x28xbf16, #tpu.memory_space<vmem>>, vector<1x4x16xbf16>
    %231 = vector.shape_cast %230 : vector<1x4x16xbf16> to vector<4x16xbf16>
    %c32_325 = arith.constant 32 : index
    %c0_326 = arith.constant 0 : index
    %232 = vector.load %arg5[%c32_325, %c0_326] : memref<52x32xbf16, #tpu.memory_space<vmem>>, vector<4x16xbf16>
    tpu.vector_store %arg5[%c32_325, %c0_326], %231 {strides = array<i32>} : memref<52x32xbf16, #tpu.memory_space<vmem>>, vector<4x16xbf16>,
    %c0_327 = arith.constant 0 : index
    %c0_328 = arith.constant 0 : index
    %c9_329 = arith.constant 9 : index
    %233 = vector.load %arg4[%c0_327, %c0_328, %c9_329] : memref<2x4x28xbf16, #tpu.memory_space<vmem>>, vector<1x4x16xbf16>
    %234 = vector.shape_cast %233 : vector<1x4x16xbf16> to vector<4x16xbf16>
    %c36_330 = arith.constant 36 : index
    %c0_331 = arith.constant 0 : index
    %235 = vector.load %arg5[%c36_330, %c0_331] : memref<52x32xbf16, #tpu.memory_space<vmem>>, vector<4x16xbf16>
    tpu.vector_store %arg5[%c36_330, %c0_331], %234 {strides = array<i32>} : memref<52x32xbf16, #tpu.memory_space<vmem>>, vector<4x16xbf16>,
    %c0_332 = arith.constant 0 : index
    %c0_333 = arith.constant 0 : index
    %c10_334 = arith.constant 10 : index
    %236 = vector.load %arg4[%c0_332, %c0_333, %c10_334] : memref<2x4x28xbf16, #tpu.memory_space<vmem>>, vector<1x4x16xbf16>
    %237 = vector.shape_cast %236 : vector<1x4x16xbf16> to vector<4x16xbf16>
    %c40_335 = arith.constant 40 : index
    %c0_336 = arith.constant 0 : index
    %238 = vector.load %arg5[%c40_335, %c0_336] : memref<52x32xbf16, #tpu.memory_space<vmem>>, vector<4x16xbf16>
    tpu.vector_store %arg5[%c40_335, %c0_336], %237 {strides = array<i32>} : memref<52x32xbf16, #tpu.memory_space<vmem>>, vector<4x16xbf16>,
    %c0_337 = arith.constant 0 : index
    %c0_338 = arith.constant 0 : index
    %c11_339 = arith.constant 11 : index
    %239 = vector.load %arg4[%c0_337, %c0_338, %c11_339] : memref<2x4x28xbf16, #tpu.memory_space<vmem>>, vector<1x4x16xbf16>
    %240 = vector.shape_cast %239 : vector<1x4x16xbf16> to vector<4x16xbf16>
    %c44_340 = arith.constant 44 : index
    %c0_341 = arith.constant 0 : index
    %241 = vector.load %arg5[%c44_340, %c0_341] : memref<52x32xbf16, #tpu.memory_space<vmem>>, vector<4x16xbf16>
    tpu.vector_store %arg5[%c44_340, %c0_341], %240 {strides = array<i32>} : memref<52x32xbf16, #tpu.memory_space<vmem>>, vector<4x16xbf16>,
    %c0_342 = arith.constant 0 : index
    %c0_343 = arith.constant 0 : index
    %c12_344 = arith.constant 12 : index
    %242 = vector.load %arg4[%c0_342, %c0_343, %c12_344] : memref<2x4x28xbf16, #tpu.memory_space<vmem>>, vector<1x4x16xbf16>
    %243 = vector.shape_cast %242 : vector<1x4x16xbf16> to vector<4x16xbf16>
    %c48_345 = arith.constant 48 : index
    %c0_346 = arith.constant 0 : index
    %244 = vector.load %arg5[%c48_345, %c0_346] : memref<52x32xbf16, #tpu.memory_space<vmem>>, vector<4x16xbf16>
    tpu.vector_store %arg5[%c48_345, %c0_346], %243 {strides = array<i32>} : memref<52x32xbf16, #tpu.memory_space<vmem>>, vector<4x16xbf16>,
    %c1_347 = arith.constant 1 : index
    %c0_348 = arith.constant 0 : index
    %c0_349 = arith.constant 0 : index
    %245 = vector.load %arg4[%c1_347, %c0_348, %c0_349] : memref<2x4x28xbf16, #tpu.memory_space<vmem>>, vector<1x4x16xbf16>
    %246 = vector.shape_cast %245 : vector<1x4x16xbf16> to vector<4x16xbf16>
    %c0_350 = arith.constant 0 : index
    %c16_351 = arith.constant 16 : index
    %247 = vector.load %arg5[%c0_350, %c16_351] : memref<52x32xbf16, #tpu.memory_space<vmem>>, vector<4x16xbf16>
    tpu.vector_store %arg5[%c0_350, %c16_351], %246 {strides = array<i32>} : memref<52x32xbf16, #tpu.memory_space<vmem>>, vector<4x16xbf16>,
    %c1_352 = arith.constant 1 : index
    %c0_353 = arith.constant 0 : index
    %c1_354 = arith.constant 1 : index
    %248 = vector.load %arg4[%c1_352, %c0_353, %c1_354] : memref<2x4x28xbf16, #tpu.memory_space<vmem>>, vector<1x4x16xbf16>
    %249 = vector.shape_cast %248 : vector<1x4x16xbf16> to vector<4x16xbf16>
    %c4_355 = arith.constant 4 : index
    %c16_356 = arith.constant 16 : index
    %250 = vector.load %arg5[%c4_355, %c16_356] : memref<52x32xbf16, #tpu.memory_space<vmem>>, vector<4x16xbf16>
    tpu.vector_store %arg5[%c4_355, %c16_356], %249 {strides = array<i32>} : memref<52x32xbf16, #tpu.memory_space<vmem>>, vector<4x16xbf16>,
    %c1_357 = arith.constant 1 : index
    %c0_358 = arith.constant 0 : index
    %c2_359 = arith.constant 2 : index
    %251 = vector.load %arg4[%c1_357, %c0_358, %c2_359] : memref<2x4x28xbf16, #tpu.memory_space<vmem>>, vector<1x4x16xbf16>
    %252 = vector.shape_cast %251 : vector<1x4x16xbf16> to vector<4x16xbf16>
    %c8_360 = arith.constant 8 : index
    %c16_361 = arith.constant 16 : index
    %253 = vector.load %arg5[%c8_360, %c16_361] : memref<52x32xbf16, #tpu.memory_space<vmem>>, vector<4x16xbf16>
    tpu.vector_store %arg5[%c8_360, %c16_361], %252 {strides = array<i32>} : memref<52x32xbf16, #tpu.memory_space<vmem>>, vector<4x16xbf16>,
    %c1_362 = arith.constant 1 : index
    %c0_363 = arith.constant 0 : index
    %c3_364 = arith.constant 3 : index
    %254 = vector.load %arg4[%c1_362, %c0_363, %c3_364] : memref<2x4x28xbf16, #tpu.memory_space<vmem>>, vector<1x4x16xbf16>
    %255 = vector.shape_cast %254 : vector<1x4x16xbf16> to vector<4x16xbf16>
    %c12_365 = arith.constant 12 : index
    %c16_366 = arith.constant 16 : index
    %256 = vector.load %arg5[%c12_365, %c16_366] : memref<52x32xbf16, #tpu.memory_space<vmem>>, vector<4x16xbf16>
    tpu.vector_store %arg5[%c12_365, %c16_366], %255 {strides = array<i32>} : memref<52x32xbf16, #tpu.memory_space<vmem>>, vector<4x16xbf16>,
    %c1_367 = arith.constant 1 : index
    %c0_368 = arith.constant 0 : index
    %c4_369 = arith.constant 4 : index
    %257 = vector.load %arg4[%c1_367, %c0_368, %c4_369] : memref<2x4x28xbf16, #tpu.memory_space<vmem>>, vector<1x4x16xbf16>
    %258 = vector.shape_cast %257 : vector<1x4x16xbf16> to vector<4x16xbf16>
    %c16_370 = arith.constant 16 : index
    %c16_371 = arith.constant 16 : index
    %259 = vector.load %arg5[%c16_370, %c16_371] : memref<52x32xbf16, #tpu.memory_space<vmem>>, vector<4x16xbf16>
    tpu.vector_store %arg5[%c16_370, %c16_371], %258 {strides = array<i32>} : memref<52x32xbf16, #tpu.memory_space<vmem>>, vector<4x16xbf16>,
    %c1_372 = arith.constant 1 : index
    %c0_373 = arith.constant 0 : index
    %c5_374 = arith.constant 5 : index
    %260 = vector.load %arg4[%c1_372, %c0_373, %c5_374] : memref<2x4x28xbf16, #tpu.memory_space<vmem>>, vector<1x4x16xbf16>
    %261 = vector.shape_cast %260 : vector<1x4x16xbf16> to vector<4x16xbf16>
    %c20_375 = arith.constant 20 : index
    %c16_376 = arith.constant 16 : index
    %262 = vector.load %arg5[%c20_375, %c16_376] : memref<52x32xbf16, #tpu.memory_space<vmem>>, vector<4x16xbf16>
    tpu.vector_store %arg5[%c20_375, %c16_376], %261 {strides = array<i32>} : memref<52x32xbf16, #tpu.memory_space<vmem>>, vector<4x16xbf16>,
    %c1_377 = arith.constant 1 : index
    %c0_378 = arith.constant 0 : index
    %c6_379 = arith.constant 6 : index
    %263 = vector.load %arg4[%c1_377, %c0_378, %c6_379] : memref<2x4x28xbf16, #tpu.memory_space<vmem>>, vector<1x4x16xbf16>
    %264 = vector.shape_cast %263 : vector<1x4x16xbf16> to vector<4x16xbf16>
    %c24_380 = arith.constant 24 : index
    %c16_381 = arith.constant 16 : index
    %265 = vector.load %arg5[%c24_380, %c16_381] : memref<52x32xbf16, #tpu.memory_space<vmem>>, vector<4x16xbf16>
    tpu.vector_store %arg5[%c24_380, %c16_381], %264 {strides = array<i32>} : memref<52x32xbf16, #tpu.memory_space<vmem>>, vector<4x16xbf16>,
    %c1_382 = arith.constant 1 : index
    %c0_383 = arith.constant 0 : index
    %c7_384 = arith.constant 7 : index
    %266 = vector.load %arg4[%c1_382, %c0_383, %c7_384] : memref<2x4x28xbf16, #tpu.memory_space<vmem>>, vector<1x4x16xbf16>
    %267 = vector.shape_cast %266 : vector<1x4x16xbf16> to vector<4x16xbf16>
    %c28_385 = arith.constant 28 : index
    %c16_386 = arith.constant 16 : index
    %268 = vector.load %arg5[%c28_385, %c16_386] : memref<52x32xbf16, #tpu.memory_space<vmem>>, vector<4x16xbf16>
    tpu.vector_store %arg5[%c28_385, %c16_386], %267 {strides = array<i32>} : memref<52x32xbf16, #tpu.memory_space<vmem>>, vector<4x16xbf16>,
    %c1_387 = arith.constant 1 : index
    %c0_388 = arith.constant 0 : index
    %c8_389 = arith.constant 8 : index
    %269 = vector.load %arg4[%c1_387, %c0_388, %c8_389] : memref<2x4x28xbf16, #tpu.memory_space<vmem>>, vector<1x4x16xbf16>
    %270 = vector.shape_cast %269 : vector<1x4x16xbf16> to vector<4x16xbf16>
    %c32_390 = arith.constant 32 : index
    %c16_391 = arith.constant 16 : index
    %271 = vector.load %arg5[%c32_390, %c16_391] : memref<52x32xbf16, #tpu.memory_space<vmem>>, vector<4x16xbf16>
    tpu.vector_store %arg5[%c32_390, %c16_391], %270 {strides = array<i32>} : memref<52x32xbf16, #tpu.memory_space<vmem>>, vector<4x16xbf16>,
    %c1_392 = arith.constant 1 : index
    %c0_393 = arith.constant 0 : index
    %c9_394 = arith.constant 9 : index
    %272 = vector.load %arg4[%c1_392, %c0_393, %c9_394] : memref<2x4x28xbf16, #tpu.memory_space<vmem>>, vector<1x4x16xbf16>
    %273 = vector.shape_cast %272 : vector<1x4x16xbf16> to vector<4x16xbf16>
    %c36_395 = arith.constant 36 : index
    %c16_396 = arith.constant 16 : index
    %274 = vector.load %arg5[%c36_395, %c16_396] : memref<52x32xbf16, #tpu.memory_space<vmem>>, vector<4x16xbf16>
    tpu.vector_store %arg5[%c36_395, %c16_396], %273 {strides = array<i32>} : memref<52x32xbf16, #tpu.memory_space<vmem>>, vector<4x16xbf16>,
    %c1_397 = arith.constant 1 : index
    %c0_398 = arith.constant 0 : index
    %c10_399 = arith.constant 10 : index
    %275 = vector.load %arg4[%c1_397, %c0_398, %c10_399] : memref<2x4x28xbf16, #tpu.memory_space<vmem>>, vector<1x4x16xbf16>
    %276 = vector.shape_cast %275 : vector<1x4x16xbf16> to vector<4x16xbf16>
    %c40_400 = arith.constant 40 : index
    %c16_401 = arith.constant 16 : index
    %277 = vector.load %arg5[%c40_400, %c16_401] : memref<52x32xbf16, #tpu.memory_space<vmem>>, vector<4x16xbf16>
    tpu.vector_store %arg5[%c40_400, %c16_401], %276 {strides = array<i32>} : memref<52x32xbf16, #tpu.memory_space<vmem>>, vector<4x16xbf16>,
    %c1_402 = arith.constant 1 : index
    %c0_403 = arith.constant 0 : index
    %c11_404 = arith.constant 11 : index
    %278 = vector.load %arg4[%c1_402, %c0_403, %c11_404] : memref<2x4x28xbf16, #tpu.memory_space<vmem>>, vector<1x4x16xbf16>
    %279 = vector.shape_cast %278 : vector<1x4x16xbf16> to vector<4x16xbf16>
    %c44_405 = arith.constant 44 : index
    %c16_406 = arith.constant 16 : index
    %280 = vector.load %arg5[%c44_405, %c16_406] : memref<52x32xbf16, #tpu.memory_space<vmem>>, vector<4x16xbf16>
    tpu.vector_store %arg5[%c44_405, %c16_406], %279 {strides = array<i32>} : memref<52x32xbf16, #tpu.memory_space<vmem>>, vector<4x16xbf16>,
    %c1_407 = arith.constant 1 : index
    %c0_408 = arith.constant 0 : index
    %c12_409 = arith.constant 12 : index
    %281 = vector.load %arg4[%c1_407, %c0_408, %c12_409] : memref<2x4x28xbf16, #tpu.memory_space<vmem>>, vector<1x4x16xbf16>
    %282 = vector.shape_cast %281 : vector<1x4x16xbf16> to vector<4x16xbf16>
    %c48_410 = arith.constant 48 : index
    %c16_411 = arith.constant 16 : index
    %283 = vector.load %arg5[%c48_410, %c16_411] : memref<52x32xbf16, #tpu.memory_space<vmem>>, vector<4x16xbf16>
    tpu.vector_store %arg5[%c48_410, %c16_411], %282 {strides = array<i32>} : memref<52x32xbf16, #tpu.memory_space<vmem>>, vector<4x16xbf16>,
    %c0_412 = arith.constant 0 : index
    %c0_413 = arith.constant 0 : index
    %284 = vector.load %arg5[%c0_412, %c0_413] : memref<52x32xbf16, #tpu.memory_space<vmem>>, vector<52x32xbf16>
    %cst_414 = arith.constant dense<0.000000e+00> : vector<8x32xf32>
    %285 = tpu.matmul %2, %284, %cst_414 {dimension_numbers = #tpu.dot_dimension_numbers<[1], [0], [0], [1], [0, 0, 1, 1], [], []>} : vector<8x52xbf16>, vector<52x32xbf16>, vector<8x32xf32> -> vector<8x32xf32>
    %286 = arith.subf %285, %201 : vector<8x32xf32>
    %cst_415 = arith.constant 5.000000e-01 : f32
    %287 = vector.broadcast %cst_415 : f32 to vector<8x32xf32>
    %288 = arith.mulf %286, %287 : vector<8x32xf32>
    %289 = arith.addf %201, %288 : vector<8x32xf32>
    %cst_416 = arith.constant 5.000000e-01 : f32
    %290 = vector.broadcast %cst_416 : f32 to vector<8x32xf32>
    %291 = arith.cmpf oge, %289, %290 : vector<8x32xf32>
    %cst_417 = arith.constant 1.000000e+00 : f32
    %cst_418 = arith.constant 0.000000e+00 : f32
    %292 = vector.broadcast %cst_417 : f32 to vector<8x32xf32>
    %293 = vector.broadcast %cst_418 : f32 to vector<8x32xf32>
    %294 = arith.select %291, %292, %293 : vector<8x32xi1>, vector<8x32xf32>
    %295 = arith.index_cast %c2_i32 : i32 to index
    %c0_419 = arith.constant 0 : index
    %c0_420 = arith.constant 0 : index
    %296 = vector.load %arg3[%295, %c0_419, %c0_420] : memref<4x8x32xf32, #tpu.memory_space<vmem>>, vector<1x8x32xf32>
    %297 = vector.shape_cast %296 : vector<1x8x32xf32> to vector<8x32xf32>
    %298 = vector.shape_cast %294 : vector<8x32xf32> to vector<1x8x32xf32>
    tpu.vector_store %arg3[%295, %c0_419, %c0_420], %298 {strides = array<i32>} : memref<4x8x32xf32, #tpu.memory_space<vmem>>, vector<1x8x32xf32>,
    %cst_421 = arith.constant 0.000000e+00 : f32
    %299 = vector.broadcast %cst_421 : f32 to vector<8x32xf32>
    %300 = arith.select %291, %299, %289 : vector<8x32xi1>, vector<8x32xf32>
    %c3_i32 = arith.constant 3 : i32
    %301 = arith.index_cast %c3_i32 : i32 to index
    %c0_422 = arith.constant 0 : index
    %c0_423 = arith.constant 0 : index
    %c0_424 = arith.constant 0 : index
    %302 = vector.load %arg2[%301, %c0_422, %c0_423, %c0_424] : memref<4x2x4x16xbf16, #tpu.memory_space<vmem>>, vector<1x2x4x16xbf16>
    %303 = vector.shape_cast %302 : vector<1x2x4x16xbf16> to vector<2x4x16xbf16>
    %c0_425 = arith.constant 0 : index
    %c0_426 = arith.constant 0 : index
    %c6_427 = arith.constant 6 : index
    %304 = vector.load %arg4[%c0_425, %c0_426, %c6_427] : memref<2x4x28xbf16, #tpu.memory_space<vmem>>, vector<2x4x16xbf16>
    tpu.vector_store %arg4[%c0_425, %c0_426, %c6_427], %303 {strides = array<i32>} : memref<2x4x28xbf16, #tpu.memory_space<vmem>>, vector<2x4x16xbf16>,
    %c0_428 = arith.constant 0 : index
    %c0_429 = arith.constant 0 : index
    %c0_430 = arith.constant 0 : index
    %305 = vector.load %arg4[%c0_428, %c0_429, %c0_430] : memref<2x4x28xbf16, #tpu.memory_space<vmem>>, vector<1x4x16xbf16>
    %306 = vector.shape_cast %305 : vector<1x4x16xbf16> to vector<4x16xbf16>
    %c0_431 = arith.constant 0 : index
    %c0_432 = arith.constant 0 : index
    %307 = vector.load %arg5[%c0_431, %c0_432] : memref<52x32xbf16, #tpu.memory_space<vmem>>, vector<4x16xbf16>
    tpu.vector_store %arg5[%c0_431, %c0_432], %306 {strides = array<i32>} : memref<52x32xbf16, #tpu.memory_space<vmem>>, vector<4x16xbf16>,
    %c0_433 = arith.constant 0 : index
    %c0_434 = arith.constant 0 : index
    %c1_435 = arith.constant 1 : index
    %308 = vector.load %arg4[%c0_433, %c0_434, %c1_435] : memref<2x4x28xbf16, #tpu.memory_space<vmem>>, vector<1x4x16xbf16>
    %309 = vector.shape_cast %308 : vector<1x4x16xbf16> to vector<4x16xbf16>
    %c4_436 = arith.constant 4 : index
    %c0_437 = arith.constant 0 : index
    %310 = vector.load %arg5[%c4_436, %c0_437] : memref<52x32xbf16, #tpu.memory_space<vmem>>, vector<4x16xbf16>
    tpu.vector_store %arg5[%c4_436, %c0_437], %309 {strides = array<i32>} : memref<52x32xbf16, #tpu.memory_space<vmem>>, vector<4x16xbf16>,
    %c0_438 = arith.constant 0 : index
    %c0_439 = arith.constant 0 : index
    %c2_440 = arith.constant 2 : index
    %311 = vector.load %arg4[%c0_438, %c0_439, %c2_440] : memref<2x4x28xbf16, #tpu.memory_space<vmem>>, vector<1x4x16xbf16>
    %312 = vector.shape_cast %311 : vector<1x4x16xbf16> to vector<4x16xbf16>
    %c8_441 = arith.constant 8 : index
    %c0_442 = arith.constant 0 : index
    %313 = vector.load %arg5[%c8_441, %c0_442] : memref<52x32xbf16, #tpu.memory_space<vmem>>, vector<4x16xbf16>
    tpu.vector_store %arg5[%c8_441, %c0_442], %312 {strides = array<i32>} : memref<52x32xbf16, #tpu.memory_space<vmem>>, vector<4x16xbf16>,
    %c0_443 = arith.constant 0 : index
    %c0_444 = arith.constant 0 : index
    %c3_445 = arith.constant 3 : index
    %314 = vector.load %arg4[%c0_443, %c0_444, %c3_445] : memref<2x4x28xbf16, #tpu.memory_space<vmem>>, vector<1x4x16xbf16>
    %315 = vector.shape_cast %314 : vector<1x4x16xbf16> to vector<4x16xbf16>
    %c12_446 = arith.constant 12 : index
    %c0_447 = arith.constant 0 : index
    %316 = vector.load %arg5[%c12_446, %c0_447] : memref<52x32xbf16, #tpu.memory_space<vmem>>, vector<4x16xbf16>
    tpu.vector_store %arg5[%c12_446, %c0_447], %315 {strides = array<i32>} : memref<52x32xbf16, #tpu.memory_space<vmem>>, vector<4x16xbf16>,
    %c0_448 = arith.constant 0 : index
    %c0_449 = arith.constant 0 : index
    %c4_450 = arith.constant 4 : index
    %317 = vector.load %arg4[%c0_448, %c0_449, %c4_450] : memref<2x4x28xbf16, #tpu.memory_space<vmem>>, vector<1x4x16xbf16>
    %318 = vector.shape_cast %317 : vector<1x4x16xbf16> to vector<4x16xbf16>
    %c16_451 = arith.constant 16 : index
    %c0_452 = arith.constant 0 : index
    %319 = vector.load %arg5[%c16_451, %c0_452] : memref<52x32xbf16, #tpu.memory_space<vmem>>, vector<4x16xbf16>
    tpu.vector_store %arg5[%c16_451, %c0_452], %318 {strides = array<i32>} : memref<52x32xbf16, #tpu.memory_space<vmem>>, vector<4x16xbf16>,
    %c0_453 = arith.constant 0 : index
    %c0_454 = arith.constant 0 : index
    %c5_455 = arith.constant 5 : index
    %320 = vector.load %arg4[%c0_453, %c0_454, %c5_455] : memref<2x4x28xbf16, #tpu.memory_space<vmem>>, vector<1x4x16xbf16>
    %321 = vector.shape_cast %320 : vector<1x4x16xbf16> to vector<4x16xbf16>
    %c20_456 = arith.constant 20 : index
    %c0_457 = arith.constant 0 : index
    %322 = vector.load %arg5[%c20_456, %c0_457] : memref<52x32xbf16, #tpu.memory_space<vmem>>, vector<4x16xbf16>
    tpu.vector_store %arg5[%c20_456, %c0_457], %321 {strides = array<i32>} : memref<52x32xbf16, #tpu.memory_space<vmem>>, vector<4x16xbf16>,
    %c0_458 = arith.constant 0 : index
    %c0_459 = arith.constant 0 : index
    %c6_460 = arith.constant 6 : index
    %323 = vector.load %arg4[%c0_458, %c0_459, %c6_460] : memref<2x4x28xbf16, #tpu.memory_space<vmem>>, vector<1x4x16xbf16>
    %324 = vector.shape_cast %323 : vector<1x4x16xbf16> to vector<4x16xbf16>
    %c24_461 = arith.constant 24 : index
    %c0_462 = arith.constant 0 : index
    %325 = vector.load %arg5[%c24_461, %c0_462] : memref<52x32xbf16, #tpu.memory_space<vmem>>, vector<4x16xbf16>
    tpu.vector_store %arg5[%c24_461, %c0_462], %324 {strides = array<i32>} : memref<52x32xbf16, #tpu.memory_space<vmem>>, vector<4x16xbf16>,
    %c0_463 = arith.constant 0 : index
    %c0_464 = arith.constant 0 : index
    %c7_465 = arith.constant 7 : index
    %326 = vector.load %arg4[%c0_463, %c0_464, %c7_465] : memref<2x4x28xbf16, #tpu.memory_space<vmem>>, vector<1x4x16xbf16>
    %327 = vector.shape_cast %326 : vector<1x4x16xbf16> to vector<4x16xbf16>
    %c28_466 = arith.constant 28 : index
    %c0_467 = arith.constant 0 : index
    %328 = vector.load %arg5[%c28_466, %c0_467] : memref<52x32xbf16, #tpu.memory_space<vmem>>, vector<4x16xbf16>
    tpu.vector_store %arg5[%c28_466, %c0_467], %327 {strides = array<i32>} : memref<52x32xbf16, #tpu.memory_space<vmem>>, vector<4x16xbf16>,
    %c0_468 = arith.constant 0 : index
    %c0_469 = arith.constant 0 : index
    %c8_470 = arith.constant 8 : index
    %329 = vector.load %arg4[%c0_468, %c0_469, %c8_470] : memref<2x4x28xbf16, #tpu.memory_space<vmem>>, vector<1x4x16xbf16>
    %330 = vector.shape_cast %329 : vector<1x4x16xbf16> to vector<4x16xbf16>
    %c32_471 = arith.constant 32 : index
    %c0_472 = arith.constant 0 : index
    %331 = vector.load %arg5[%c32_471, %c0_472] : memref<52x32xbf16, #tpu.memory_space<vmem>>, vector<4x16xbf16>
    tpu.vector_store %arg5[%c32_471, %c0_472], %330 {strides = array<i32>} : memref<52x32xbf16, #tpu.memory_space<vmem>>, vector<4x16xbf16>,
    %c0_473 = arith.constant 0 : index
    %c0_474 = arith.constant 0 : index
    %c9_475 = arith.constant 9 : index
    %332 = vector.load %arg4[%c0_473, %c0_474, %c9_475] : memref<2x4x28xbf16, #tpu.memory_space<vmem>>, vector<1x4x16xbf16>
    %333 = vector.shape_cast %332 : vector<1x4x16xbf16> to vector<4x16xbf16>
    %c36_476 = arith.constant 36 : index
    %c0_477 = arith.constant 0 : index
    %334 = vector.load %arg5[%c36_476, %c0_477] : memref<52x32xbf16, #tpu.memory_space<vmem>>, vector<4x16xbf16>
    tpu.vector_store %arg5[%c36_476, %c0_477], %333 {strides = array<i32>} : memref<52x32xbf16, #tpu.memory_space<vmem>>, vector<4x16xbf16>,
    %c0_478 = arith.constant 0 : index
    %c0_479 = arith.constant 0 : index
    %c10_480 = arith.constant 10 : index
    %335 = vector.load %arg4[%c0_478, %c0_479, %c10_480] : memref<2x4x28xbf16, #tpu.memory_space<vmem>>, vector<1x4x16xbf16>
    %336 = vector.shape_cast %335 : vector<1x4x16xbf16> to vector<4x16xbf16>
    %c40_481 = arith.constant 40 : index
    %c0_482 = arith.constant 0 : index
    %337 = vector.load %arg5[%c40_481, %c0_482] : memref<52x32xbf16, #tpu.memory_space<vmem>>, vector<4x16xbf16>
    tpu.vector_store %arg5[%c40_481, %c0_482], %336 {strides = array<i32>} : memref<52x32xbf16, #tpu.memory_space<vmem>>, vector<4x16xbf16>,
    %c0_483 = arith.constant 0 : index
    %c0_484 = arith.constant 0 : index
    %c11_485 = arith.constant 11 : index
    %338 = vector.load %arg4[%c0_483, %c0_484, %c11_485] : memref<2x4x28xbf16, #tpu.memory_space<vmem>>, vector<1x4x16xbf16>
    %339 = vector.shape_cast %338 : vector<1x4x16xbf16> to vector<4x16xbf16>
    %c44_486 = arith.constant 44 : index
    %c0_487 = arith.constant 0 : index
    %340 = vector.load %arg5[%c44_486, %c0_487] : memref<52x32xbf16, #tpu.memory_space<vmem>>, vector<4x16xbf16>
    tpu.vector_store %arg5[%c44_486, %c0_487], %339 {strides = array<i32>} : memref<52x32xbf16, #tpu.memory_space<vmem>>, vector<4x16xbf16>,
    %c0_488 = arith.constant 0 : index
    %c0_489 = arith.constant 0 : index
    %c12_490 = arith.constant 12 : index
    %341 = vector.load %arg4[%c0_488, %c0_489, %c12_490] : memref<2x4x28xbf16, #tpu.memory_space<vmem>>, vector<1x4x16xbf16>
    %342 = vector.shape_cast %341 : vector<1x4x16xbf16> to vector<4x16xbf16>
    %c48_491 = arith.constant 48 : index
    %c0_492 = arith.constant 0 : index
    %343 = vector.load %arg5[%c48_491, %c0_492] : memref<52x32xbf16, #tpu.memory_space<vmem>>, vector<4x16xbf16>
    tpu.vector_store %arg5[%c48_491, %c0_492], %342 {strides = array<i32>} : memref<52x32xbf16, #tpu.memory_space<vmem>>, vector<4x16xbf16>,
    %c1_493 = arith.constant 1 : index
    %c0_494 = arith.constant 0 : index
    %c0_495 = arith.constant 0 : index
    %344 = vector.load %arg4[%c1_493, %c0_494, %c0_495] : memref<2x4x28xbf16, #tpu.memory_space<vmem>>, vector<1x4x16xbf16>
    %345 = vector.shape_cast %344 : vector<1x4x16xbf16> to vector<4x16xbf16>
    %c0_496 = arith.constant 0 : index
    %c16_497 = arith.constant 16 : index
    %346 = vector.load %arg5[%c0_496, %c16_497] : memref<52x32xbf16, #tpu.memory_space<vmem>>, vector<4x16xbf16>
    tpu.vector_store %arg5[%c0_496, %c16_497], %345 {strides = array<i32>} : memref<52x32xbf16, #tpu.memory_space<vmem>>, vector<4x16xbf16>,
    %c1_498 = arith.constant 1 : index
    %c0_499 = arith.constant 0 : index
    %c1_500 = arith.constant 1 : index
    %347 = vector.load %arg4[%c1_498, %c0_499, %c1_500] : memref<2x4x28xbf16, #tpu.memory_space<vmem>>, vector<1x4x16xbf16>
    %348 = vector.shape_cast %347 : vector<1x4x16xbf16> to vector<4x16xbf16>
    %c4_501 = arith.constant 4 : index
    %c16_502 = arith.constant 16 : index
    %349 = vector.load %arg5[%c4_501, %c16_502] : memref<52x32xbf16, #tpu.memory_space<vmem>>, vector<4x16xbf16>
    tpu.vector_store %arg5[%c4_501, %c16_502], %348 {strides = array<i32>} : memref<52x32xbf16, #tpu.memory_space<vmem>>, vector<4x16xbf16>,
    %c1_503 = arith.constant 1 : index
    %c0_504 = arith.constant 0 : index
    %c2_505 = arith.constant 2 : index
    %350 = vector.load %arg4[%c1_503, %c0_504, %c2_505] : memref<2x4x28xbf16, #tpu.memory_space<vmem>>, vector<1x4x16xbf16>
    %351 = vector.shape_cast %350 : vector<1x4x16xbf16> to vector<4x16xbf16>
    %c8_506 = arith.constant 8 : index
    %c16_507 = arith.constant 16 : index
    %352 = vector.load %arg5[%c8_506, %c16_507] : memref<52x32xbf16, #tpu.memory_space<vmem>>, vector<4x16xbf16>
    tpu.vector_store %arg5[%c8_506, %c16_507], %351 {strides = array<i32>} : memref<52x32xbf16, #tpu.memory_space<vmem>>, vector<4x16xbf16>,
    %c1_508 = arith.constant 1 : index
    %c0_509 = arith.constant 0 : index
    %c3_510 = arith.constant 3 : index
    %353 = vector.load %arg4[%c1_508, %c0_509, %c3_510] : memref<2x4x28xbf16, #tpu.memory_space<vmem>>, vector<1x4x16xbf16>
    %354 = vector.shape_cast %353 : vector<1x4x16xbf16> to vector<4x16xbf16>
    %c12_511 = arith.constant 12 : index
    %c16_512 = arith.constant 16 : index
    %355 = vector.load %arg5[%c12_511, %c16_512] : memref<52x32xbf16, #tpu.memory_space<vmem>>, vector<4x16xbf16>
    tpu.vector_store %arg5[%c12_511, %c16_512], %354 {strides = array<i32>} : memref<52x32xbf16, #tpu.memory_space<vmem>>, vector<4x16xbf16>,
    %c1_513 = arith.constant 1 : index
    %c0_514 = arith.constant 0 : index
    %c4_515 = arith.constant 4 : index
    %356 = vector.load %arg4[%c1_513, %c0_514, %c4_515] : memref<2x4x28xbf16, #tpu.memory_space<vmem>>, vector<1x4x16xbf16>
    %357 = vector.shape_cast %356 : vector<1x4x16xbf16> to vector<4x16xbf16>
    %c16_516 = arith.constant 16 : index
    %c16_517 = arith.constant 16 : index
    %358 = vector.load %arg5[%c16_516, %c16_517] : memref<52x32xbf16, #tpu.memory_space<vmem>>, vector<4x16xbf16>
    tpu.vector_store %arg5[%c16_516, %c16_517], %357 {strides = array<i32>} : memref<52x32xbf16, #tpu.memory_space<vmem>>, vector<4x16xbf16>,
    %c1_518 = arith.constant 1 : index
    %c0_519 = arith.constant 0 : index
    %c5_520 = arith.constant 5 : index
    %359 = vector.load %arg4[%c1_518, %c0_519, %c5_520] : memref<2x4x28xbf16, #tpu.memory_space<vmem>>, vector<1x4x16xbf16>
    %360 = vector.shape_cast %359 : vector<1x4x16xbf16> to vector<4x16xbf16>
    %c20_521 = arith.constant 20 : index
    %c16_522 = arith.constant 16 : index
    %361 = vector.load %arg5[%c20_521, %c16_522] : memref<52x32xbf16, #tpu.memory_space<vmem>>, vector<4x16xbf16>
    tpu.vector_store %arg5[%c20_521, %c16_522], %360 {strides = array<i32>} : memref<52x32xbf16, #tpu.memory_space<vmem>>, vector<4x16xbf16>,
    %c1_523 = arith.constant 1 : index
    %c0_524 = arith.constant 0 : index
    %c6_525 = arith.constant 6 : index
    %362 = vector.load %arg4[%c1_523, %c0_524, %c6_525] : memref<2x4x28xbf16, #tpu.memory_space<vmem>>, vector<1x4x16xbf16>
    %363 = vector.shape_cast %362 : vector<1x4x16xbf16> to vector<4x16xbf16>
    %c24_526 = arith.constant 24 : index
    %c16_527 = arith.constant 16 : index
    %364 = vector.load %arg5[%c24_526, %c16_527] : memref<52x32xbf16, #tpu.memory_space<vmem>>, vector<4x16xbf16>
    tpu.vector_store %arg5[%c24_526, %c16_527], %363 {strides = array<i32>} : memref<52x32xbf16, #tpu.memory_space<vmem>>, vector<4x16xbf16>,
    %c1_528 = arith.constant 1 : index
    %c0_529 = arith.constant 0 : index
    %c7_530 = arith.constant 7 : index
    %365 = vector.load %arg4[%c1_528, %c0_529, %c7_530] : memref<2x4x28xbf16, #tpu.memory_space<vmem>>, vector<1x4x16xbf16>
    %366 = vector.shape_cast %365 : vector<1x4x16xbf16> to vector<4x16xbf16>
    %c28_531 = arith.constant 28 : index
    %c16_532 = arith.constant 16 : index
    %367 = vector.load %arg5[%c28_531, %c16_532] : memref<52x32xbf16, #tpu.memory_space<vmem>>, vector<4x16xbf16>
    tpu.vector_store %arg5[%c28_531, %c16_532], %366 {strides = array<i32>} : memref<52x32xbf16, #tpu.memory_space<vmem>>, vector<4x16xbf16>,
    %c1_533 = arith.constant 1 : index
    %c0_534 = arith.constant 0 : index
    %c8_535 = arith.constant 8 : index
    %368 = vector.load %arg4[%c1_533, %c0_534, %c8_535] : memref<2x4x28xbf16, #tpu.memory_space<vmem>>, vector<1x4x16xbf16>
    %369 = vector.shape_cast %368 : vector<1x4x16xbf16> to vector<4x16xbf16>
    %c32_536 = arith.constant 32 : index
    %c16_537 = arith.constant 16 : index
    %370 = vector.load %arg5[%c32_536, %c16_537] : memref<52x32xbf16, #tpu.memory_space<vmem>>, vector<4x16xbf16>
    tpu.vector_store %arg5[%c32_536, %c16_537], %369 {strides = array<i32>} : memref<52x32xbf16, #tpu.memory_space<vmem>>, vector<4x16xbf16>,
    %c1_538 = arith.constant 1 : index
    %c0_539 = arith.constant 0 : index
    %c9_540 = arith.constant 9 : index
    %371 = vector.load %arg4[%c1_538, %c0_539, %c9_540] : memref<2x4x28xbf16, #tpu.memory_space<vmem>>, vector<1x4x16xbf16>
    %372 = vector.shape_cast %371 : vector<1x4x16xbf16> to vector<4x16xbf16>
    %c36_541 = arith.constant 36 : index
    %c16_542 = arith.constant 16 : index
    %373 = vector.load %arg5[%c36_541, %c16_542] : memref<52x32xbf16, #tpu.memory_space<vmem>>, vector<4x16xbf16>
    tpu.vector_store %arg5[%c36_541, %c16_542], %372 {strides = array<i32>} : memref<52x32xbf16, #tpu.memory_space<vmem>>, vector<4x16xbf16>,
    %c1_543 = arith.constant 1 : index
    %c0_544 = arith.constant 0 : index
    %c10_545 = arith.constant 10 : index
    %374 = vector.load %arg4[%c1_543, %c0_544, %c10_545] : memref<2x4x28xbf16, #tpu.memory_space<vmem>>, vector<1x4x16xbf16>
    %375 = vector.shape_cast %374 : vector<1x4x16xbf16> to vector<4x16xbf16>
    %c40_546 = arith.constant 40 : index
    %c16_547 = arith.constant 16 : index
    %376 = vector.load %arg5[%c40_546, %c16_547] : memref<52x32xbf16, #tpu.memory_space<vmem>>, vector<4x16xbf16>
    tpu.vector_store %arg5[%c40_546, %c16_547], %375 {strides = array<i32>} : memref<52x32xbf16, #tpu.memory_space<vmem>>, vector<4x16xbf16>,
    %c1_548 = arith.constant 1 : index
    %c0_549 = arith.constant 0 : index
    %c11_550 = arith.constant 11 : index
    %377 = vector.load %arg4[%c1_548, %c0_549, %c11_550] : memref<2x4x28xbf16, #tpu.memory_space<vmem>>, vector<1x4x16xbf16>
    %378 = vector.shape_cast %377 : vector<1x4x16xbf16> to vector<4x16xbf16>
    %c44_551 = arith.constant 44 : index
    %c16_552 = arith.constant 16 : index
    %379 = vector.load %arg5[%c44_551, %c16_552] : memref<52x32xbf16, #tpu.memory_space<vmem>>, vector<4x16xbf16>
    tpu.vector_store %arg5[%c44_551, %c16_552], %378 {strides = array<i32>} : memref<52x32xbf16, #tpu.memory_space<vmem>>, vector<4x16xbf16>,
    %c1_553 = arith.constant 1 : index
    %c0_554 = arith.constant 0 : index
    %c12_555 = arith.constant 12 : index
    %380 = vector.load %arg4[%c1_553, %c0_554, %c12_555] : memref<2x4x28xbf16, #tpu.memory_space<vmem>>, vector<1x4x16xbf16>
    %381 = vector.shape_cast %380 : vector<1x4x16xbf16> to vector<4x16xbf16>
    %c48_556 = arith.constant 48 : index
    %c16_557 = arith.constant 16 : index
    %382 = vector.load %arg5[%c48_556, %c16_557] : memref<52x32xbf16, #tpu.memory_space<vmem>>, vector<4x16xbf16>
    tpu.vector_store %arg5[%c48_556, %c16_557], %381 {strides = array<i32>} : memref<52x32xbf16, #tpu.memory_space<vmem>>, vector<4x16xbf16>,
    %c0_558 = arith.constant 0 : index
    %c0_559 = arith.constant 0 : index
    %383 = vector.load %arg5[%c0_558, %c0_559] : memref<52x32xbf16, #tpu.memory_space<vmem>>, vector<52x32xbf16>
    %cst_560 = arith.constant dense<0.000000e+00> : vector<8x32xf32>
    %384 = tpu.matmul %2, %383, %cst_560 {dimension_numbers = #tpu.dot_dimension_numbers<[1], [0], [0], [1], [0, 0, 1, 1], [], []>} : vector<8x52xbf16>, vector<52x32xbf16>, vector<8x32xf32> -> vector<8x32xf32>
    %385 = arith.subf %384, %300 : vector<8x32xf32>
    %cst_561 = arith.constant 5.000000e-01 : f32
    %386 = vector.broadcast %cst_561 : f32 to vector<8x32xf32>
    %387 = arith.mulf %385, %386 : vector<8x32xf32>
    %388 = arith.addf %300, %387 : vector<8x32xf32>
    %cst_562 = arith.constant 5.000000e-01 : f32
    %389 = vector.broadcast %cst_562 : f32 to vector<8x32xf32>
    %390 = arith.cmpf oge, %388, %389 : vector<8x32xf32>
    %cst_563 = arith.constant 1.000000e+00 : f32
    %cst_564 = arith.constant 0.000000e+00 : f32
    %391 = vector.broadcast %cst_563 : f32 to vector<8x32xf32>
    %392 = vector.broadcast %cst_564 : f32 to vector<8x32xf32>
    %393 = arith.select %390, %391, %392 : vector<8x32xi1>, vector<8x32xf32>
    %394 = arith.index_cast %c3_i32 : i32 to index
    %c0_565 = arith.constant 0 : index
    %c0_566 = arith.constant 0 : index
    %395 = vector.load %arg3[%394, %c0_565, %c0_566] : memref<4x8x32xf32, #tpu.memory_space<vmem>>, vector<1x8x32xf32>
    %396 = vector.shape_cast %395 : vector<1x8x32xf32> to vector<8x32xf32>
    %397 = vector.shape_cast %393 : vector<8x32xf32> to vector<1x8x32xf32>
    tpu.vector_store %arg3[%394, %c0_565, %c0_566], %397 {strides = array<i32>} : memref<4x8x32xf32, #tpu.memory_space<vmem>>, vector<1x8x32xf32>,
    %cst_567 = arith.constant 0.000000e+00 : f32
    %398 = vector.broadcast %cst_567 : f32 to vector<8x32xf32>
    %399 = arith.select %390, %398, %388 : vector<8x32xi1>, vector<8x32xf32>
    %c4_i32 = arith.constant 4 : i32
    return
  }
  func.func @transform_0(%arg0: i32) -> (i32, i32) {
    %c0_i32 = arith.constant 0 : i32
    %c0_i32_0 = arith.constant 0 : i32
    %c0_i32_1 = arith.constant 0 : i32
    return %c0_i32, %c0_i32_0 : i32, i32
  }
  func.func @transform_1(%arg0: i32) -> (i32, i32, i32, i32) {
    %c0_i32 = arith.constant 0 : i32
    %c0_i32_0 = arith.constant 0 : i32
    %c0_i32_1 = arith.constant 0 : i32
    %c0_i32_2 = arith.constant 0 : i32
    return %c0_i32, %arg0, %c0_i32_0, %c0_i32_1 : i32, i32, i32, i32
  }
  func.func @transform_2(%arg0: i32) -> (i32, i32, i32) {
    %c0_i32 = arith.constant 0 : i32
    %c0_i32_0 = arith.constant 0 : i32
    %c0_i32_1 = arith.constant 0 : i32
    return %c0_i32, %c0_i32_0, %arg0 : i32, i32, i32
  }
}

</mosaic_0001>

<bundles_post_ra>
// kernel: decoder_convolution_layer.1
= control target key start
LH: loop header
LB: loop body
LE: loop exit
PB: predicated region body
PF: predicated region fallthrough
CT: control target
= control target key end

     0   :  { %vm12_vm0 = vcmask 222208   ;;  %v1987_v2 = vmov 0   ;;  %s1988_s13 = smov 6   ;;  %vm26_vm1 = vcmask 173104   ;;  %v1989_v9 = vmov 1983009808   ;;  %s2538_s1 = inlined_call_operand.vmem [shape: bf16[4,2,4,16], index: 1, kind: input, shape index: {}]   ;;  %s2539_s0 = inlined_call_operand.vmem [shape: bf16[8,52], index: 0, kind: input, shape index: {}]   ;;  %s2540_s2 = inlined_call_operand.vmem [shape: f32[4,8,32], index: 2, kind: output, shape index: {}]  }
   0x1   :  { %v16_v0 = vld [vmem:[%s2538_s1] sm:$0x3]  ;;  %v1770_v1 = vld [vmem:[%s2538_s1 + $0x4] sm:$0x3]  ;;  %13 = vst.msk [vmem:[#allocation2] sm:$0x3] %vm12_vm0, %v1987_v2  ;;  %v36_v10 = vunpack.c.l.s4 %v1989_v9  ;;  %v38_v11 = vlaneseq }
   0x2   :  { %14 = vst.msk [vmem:[#allocation2 + $0x2] sm:$0x3] %vm12_vm0, %v1987_v2  ;;  %20 = vrot.lane.b32.xlu0 %v16_v0, %s1988_s13  ;;  %461 = vrot.lane.b32.xlu1 %v1770_v1, %s1988_s13  ;;  %v17_v3 = vld [vmem:[%s2538_s1 + $0x2] sm:$0x3]  ;;  %v1771_v4 = vld [vmem:[%s2538_s1 + $0x6] sm:$0x3] }
   0x3   :  { %v1791_v5 = vld [vmem:[%s2538_s1 + $0x8] sm:$0x3]  ;;  %v1792_v6 = vld [vmem:[%s2538_s1 + $0xa] sm:$0x3]  ;;  %v1813_v7 = vld [vmem:[%s2538_s1 + $0xe] sm:$0x3]  ;;  %v37_v13 = vunpack.c.0.s8 %v36_v10 }
   0x4   :  { %v1812_v8 = vld [vmem:[%s2538_s1 + $0xc] sm:$0x3]  ;;  %v39_v14 = vshrl.u32 %v38_v11, 7  ;;  %vm30_vm2 = vcmask 123904   ;;  %s1990_s1 = smov 116   ;;  %s1991_s26 = smov 126  }
   0x5   :  { %s1992_s27 = smov 127   ;;  %s1993_s28 = smov 16   ;;  %v1998_v37 = vmov 0.0   ;;  %vm2015_vm3 = vmmov 0   ;;  %vm208_vm4 = vcmask 255104   ;;  %vm45_vm5 = vcmask 125954  }
   0x6   :  { %22 = vrot.lane.b32.xlu0 %v17_v3, %s1988_s13  ;;  %463 = vrot.lane.b32.xlu1 %v1771_v4, %s1988_s13  ;;  %v2065_v16 = vsub.s32 %v37_v13, %v39_v14  ;;  %s1994_s29 = smov 125   ;;  %s1995_s30 = smov 14   ;;  %vm223_vm6 = vcmask 257154   ;;  %vm405_vm7 = vcmask 1041408   ;;  %vm401_vm8 = vcmask 424960  }
   0x7   :  { %s1996_s3 = smov 15   ;;  %s1997_s4 = smov 124   ;;  %1853 = vmatprep.subr.bf16.mxu0 %v1998_v37  ;;  %1865 = vmatprep.subr.bf16.mxu1 %v1998_v37  ;;  %vm453_vm9 = vcmask 261120  }
   0x8   :  { %s1999_s5 = smov 13   ;;  %s2000_s6 = smov 122   ;;  %1861 = vmatprep.mubr.msk.bf16.mxu0 %vm2015_vm3, %v1998_v37  ;;  %1873 = vmatprep.mubr.msk.bf16.mxu1 %vm2015_vm3, %v1998_v37 }
   0x9   :  { %s2001_s7 = smov 123   ;;  %s2002_s8 = smov 12  }
   0xa   :  { %892 = vrot.lane.b32.xlu0 %v1791_v5, %s1988_s13  ;;  %894 = vrot.lane.b32.xlu1 %v1792_v6, %s1988_s13  ;;  %s2003_s9 = smov 121   ;;  %s2004_s10 = smov 10  }
   0xb   :  { %s2005_s11 = smov 11   ;;  %s2006_s12 = smov 120  }
   0xc   :  { %s2007_s14 = smov 9   ;;  %s2008_s15 = smov 118  }
   0xd   :  { %s2009_s16 = smov 119   ;;  %s2010_s17 = smov 8  }
   0xe   :  { %1325 = vrot.lane.b32.xlu1 %v1813_v7, %s1988_s13  ;;  %1323 = vrot.lane.b32.xlu0 %v1812_v8, %s1988_s13  ;;  %s2011_s18 = smov 117   ;;  %s2012_s19 = smov 7  }
   0xf   :  { %s2013_s20 = smov 4   ;;  %s2014_s21 = smov 5  }
  0x74   :  { %v21_v12 = vpop.permute.xlu0 %20  ;;  %v462_v23 = vpop.permute.xlu1 %461 }
  0x75   :  { %27 = vst.msk [vmem:[#allocation2] sm:$0x3] %vm26_vm1, %v21_v12 }
  0x78   :  { %v23_v15 = vpop.permute.xlu0 %22  ;;  %v464_v33 = vpop.permute.xlu1 %463 }
  0x79   :  { %28 = vst.msk [vmem:[#allocation2 + $0x2] sm:$0x3] %vm26_vm1, %v23_v15 }
  0x7c   :  { %v29_v17 = vld [vmem:[#allocation2] sm:$0x3]  ;;  %v893_v46 = vpop.permute.xlu0 %892  ;;  %v895_v55 = vpop.permute.xlu1 %894 }
  0x7d   :  { %v2067_v18 = vld.sshfl [vmem:[#allocation2] sm:$0x3 pattern:$0x76325410]  ;;  %31 = vst.msk [vmem:[#allocation3] sm:$0x3] %vm30_vm2, %v29_v17 }
  0x7e   :  { %191 = vrot.lane.b32.xlu0 %v2067_v18, %s1990_s1  ;;  %56 = vrot.lane.b32.xlu1 %v2067_v18, %s1991_s26  ;;  %v1930_v19 = vld [vmem:[#allocation2] ss:$0 sps:$4 sm:$0x33]  }
  0x7f   :  { %v41_v20 = vrot.slane %v1930_v19, %v2065_v16  ;;  %v1931_v21 = vld [vmem:[#allocation2] ss:$0 sps:$4 sm:$0x33]  }
  0x80   :  { %v2075_v22 = vld.sshfl [vmem:[#allocation2 + $0x2] sm:$0x3 pattern:$0x76325410]  ;;  %v69_v24 = vrot.slane %v1931_v21, %v2065_v16  ;;  %v2084_v32 = vld [vmem:[#allocation2] sm:$0x3]  ;;  %v1324_v4 = vpop.permute.xlu0 %1323  ;;  %v1326_v11 = vpop.permute.xlu1 %1325 }
  0x81   :  { %v1932_v25 = vld [vmem:[#allocation2 + $0x2] ss:$0 sps:$4 sm:$0x33]   ;;  %v1934_v26 = vld [vmem:[#allocation2] ss:$0 sps:$4 sm:$0x33]   ;;  %v170_v61 = vcombine.low %v2084_v32, %v2084_v32 }
  0x82   :  { %42 = vrot.lane.b32.xlu0 %v41_v20, %s1992_s27  ;;  %205 = vrot.lane.b32.xlu1 %v2075_v22, %s1993_s28  ;;  %v1933_v27 = vld [vmem:[#allocation2 + $0x2] ss:$0 sps:$4 sm:$0x33]   ;;  %v1935_v28 = vld [vmem:[#allocation2] ss:$0 sps:$4 sm:$0x33]   ;;  %v219_v34 = vrot.slane %v1932_v25, %v2065_v16  ;;  %v96_v39 = vrot.slane %v1934_v26, %v2065_v16 }
  0x83   :  { %v1936_v29 = vld [vmem:[#allocation2 + $0x2] ss:$0 sps:$4 sm:$0x33]   ;;  %v1938_v31 = vld [vmem:[#allocation2] ss:$0 sps:$4 sm:$0x33]   ;;  %v247_v38 = vrot.slane %v1933_v27, %v2065_v16  ;;  %v123_v40 = vrot.slane %v1935_v28, %v2065_v16  ;;  %v177_v62 = vrot.slane %v170_v61, %v2065_v16 }
  0x84   :  { %v1937_v30 = vld [vmem:[#allocation2 + $0x2] ss:$0 sps:$4 sm:$0x33]   ;;  %467 = vst.msk [vmem:[#allocation2] sm:$0x3] %vm26_vm1, %v462_v23  ;;  %v274_v47 = vrot.slane %v1936_v29, %v2065_v16  ;;  %v150_v60 = vrot.slane %v1938_v31, %v2065_v16 }
  0x85   :  { %v2088_v35 = vld [vmem:[#allocation2 + $0x2] ss:$0 sps:$4 sm:$0x33]   ;;  %v301_v59 = vrot.slane %v1937_v30, %v2065_v16 }
  0x86   :  { %70 = vrot.lane.b32.xlu0 %v69_v24, %s1994_s29  ;;  %234 = vrot.lane.b32.xlu1 %v2075_v22, %s1995_s30  ;;  %v2090_v36 = vld [vmem:[#allocation2 + $0x2] ss:$0 sps:$4 sm:$0x33]   ;;  %v328_v63 = vrot.slane %v2088_v35, %v2065_v16 }
  0x87   :  { %468 = vst.msk [vmem:[#allocation2 + $0x2] sm:$0x3] %vm26_vm1, %v464_v33  ;;  %v355_v8 = vrot.slane %v2090_v36, %v2065_v16 }
  0x8a   :  { %220 = vrot.lane.b32.xlu0 %v219_v34, %s1996_s3  ;;  %83 = vrot.lane.b32.xlu1 %v2067_v18, %s1997_s4 }
  0x8b   :  { %v2110_v41 = vld [vmem:[#allocation2] sm:$0x3] }
  0x8c   :  { %v2112_v42 = vld.sshfl [vmem:[#allocation2] sm:$0x3 pattern:$0x76325410] }
  0x8d   :  { %v2114_v43 = vld [vmem:[#allocation2] ss:$0 sps:$4 sm:$0x33]  }
  0x8e   :  { %248 = vrot.lane.b32.xlu0 %v247_v38, %s1999_s5  ;;  %110 = vrot.lane.b32.xlu1 %v2067_v18, %s2000_s6  ;;  %v2116_v44 = vld [vmem:[#allocation2] ss:$0 sps:$4 sm:$0x33]   ;;  %v2125_v50 = vld [vmem:[#allocation2 + $0x2] ss:$0 sps:$4 sm:$0x33]   ;;  %v480_v17 = vrot.slane %v2114_v43, %v2065_v16 }
  0x8f   :  { %v2118_v45 = vld [vmem:[#allocation2] ss:$0 sps:$4 sm:$0x33]   ;;  %v2127_v51 = vld [vmem:[#allocation2 + $0x2] ss:$0 sps:$4 sm:$0x33]   ;;  %v507_v20 = vrot.slane %v2116_v44, %v2065_v16  ;;  %v655_v21 = vrot.slane %v2125_v50, %v2065_v16 }
  0x90   :  { %v2121_v48 = vld [vmem:[#allocation2] ss:$0 sps:$4 sm:$0x33]   ;;  %v2129_v52 = vld [vmem:[#allocation2 + $0x2] ss:$0 sps:$4 sm:$0x33]   ;;  %v534_v23 = vrot.slane %v2118_v45, %v2065_v16 }
  0x91   :  { %v2123_v49 = vld.sshfl [vmem:[#allocation2 + $0x2] sm:$0x3 pattern:$0x76325410]  ;;  %v2133_v54 = vld [vmem:[#allocation2] sm:$0x3]  ;;  %v561_v24 = vrot.slane %v2121_v48, %v2065_v16  ;;  %v709_v25 = vrot.slane %v2129_v52, %v2065_v16 }
  0x92   :  { %97 = vrot.lane.b32.xlu0 %v96_v39, %s2001_s7  ;;  %261 = vrot.lane.b32.xlu1 %v2075_v22, %s2002_s8  ;;  %v2131_v53 = vld [vmem:[#allocation2] ss:$0 sps:$4 sm:$0x33]   ;;  %v2138_v56 = vld [vmem:[#allocation2 + $0x2] ss:$0 sps:$4 sm:$0x33]   ;;  %v608_v28 = vcombine.low %v2133_v54, %v2133_v54 }
  0x93   :  { %898 = vst.msk [vmem:[#allocation2] sm:$0x3] %vm26_vm1, %v893_v46  ;;  %v2141_v57 = vld [vmem:[#allocation2 + $0x2] ss:$0 sps:$4 sm:$0x33]   ;;  %v736_v26 = vrot.slane %v2138_v56, %v2065_v16  ;;  %v588_v27 = vrot.slane %v2131_v53, %v2065_v16 }
  0x94   :  { %v2143_v58 = vld [vmem:[#allocation2 + $0x2] sm:$0x3]  ;;  %v615_v29 = vrot.slane %v608_v28, %v2065_v16  ;;  %v763_v30 = vrot.slane %v2141_v57, %v2065_v16 }
  0x95   :  { %899 = vst.msk [vmem:[#allocation2 + $0x2] sm:$0x3] %vm26_vm1, %v895_v55  ;;  %v783_v31 = vcombine.low %v2143_v58, %v2143_v58 }
  0x96   :  { %124 = vrot.lane.b32.xlu0 %v123_v40, %s2003_s9  ;;  %288 = vrot.lane.b32.xlu1 %v2075_v22, %s2004_s10 }
  0x97   :  { %v790_v32 = vrot.slane %v783_v31, %v2065_v16 }
  0x9a   :  { %275 = vrot.lane.b32.xlu0 %v274_v47, %s2005_s11  ;;  %137 = vrot.lane.b32.xlu1 %v2067_v18, %s2006_s12  ;;  %v2165_v0 = vld [vmem:[#allocation2] sm:$0x3] }
  0x9b   :  { %v2167_v1 = vld.sshfl [vmem:[#allocation2] sm:$0x3 pattern:$0x76325410] }
  0x9c   :  { %v1951_v2 = vld [vmem:[#allocation2] ss:$0 sps:$4 sm:$0x33]   ;;  %v1953_v10 = vld [vmem:[#allocation2 + $0x2] ss:$0 sps:$4 sm:$0x33]  }
  0x9d   :  { %v2169_v3 = vld [vmem:[#allocation2] ss:$0 sps:$4 sm:$0x33]   ;;  %v2181_v12 = vld [vmem:[#allocation2 + $0x2] ss:$0 sps:$4 sm:$0x33]   ;;  %v911_v33 = vrot.slane %v1951_v2, %v2065_v16  ;;  %v1086_v35 = vrot.slane %v1953_v10, %v2065_v16 }
  0x9e   :  { %302 = vrot.lane.b32.xlu0 %v301_v59, %s2007_s14  ;;  %164 = vrot.lane.b32.xlu1 %v2067_v18, %s2008_s15  ;;  %v2171_v5 = vld [vmem:[#allocation2] ss:$0 sps:$4 sm:$0x33]   ;;  %v2183_v13 = vld [vmem:[#allocation2 + $0x2] ss:$0 sps:$4 sm:$0x33]   ;;  %v938_v34 = vrot.slane %v2169_v3, %v2065_v16  ;;  %v1113_v36 = vrot.slane %v2181_v12, %v2065_v16 }
  0x9f   :  { %v2173_v6 = vld [vmem:[#allocation2] ss:$0 sps:$4 sm:$0x33]   ;;  %v2187_v15 = vld [vmem:[#allocation2 + $0x2] ss:$0 sps:$4 sm:$0x33]   ;;  %v965_v40 = vrot.slane %v2171_v5, %v2065_v16  ;;  %v1140_v47 = vrot.slane %v2183_v13, %v2065_v16 }
  0xa0   :  { %v2175_v7 = vld [vmem:[#allocation2] ss:$0 sps:$4 sm:$0x33]   ;;  %v2195_v18 = vld [vmem:[#allocation2 + $0x2] ss:$0 sps:$4 sm:$0x33]   ;;  %v992_v44 = vrot.slane %v2173_v6, %v2065_v16  ;;  %v1167_v50 = vrot.slane %v2187_v15, %v2065_v16 }
  0xa1   :  { %v2179_v9 = vld.sshfl [vmem:[#allocation2 + $0x2] sm:$0x3 pattern:$0x76325410]  ;;  %v1019_v53 = vrot.slane %v2175_v7, %v2065_v16  ;;  %v1194_v61 = vrot.slane %v2195_v18, %v2065_v16 }
  0xa2   :  { %151 = vrot.lane.b32.xlu0 %v150_v60, %s2009_s16  ;;  %315 = vrot.lane.b32.xlu1 %v2075_v22, %s2010_s17  ;;  %v2185_v14 = vld [vmem:[#allocation2] ss:$0 sps:$4 sm:$0x33]   ;;  %v2197_v19 = vld [vmem:[#allocation2 + $0x2] ss:$0 sps:$4 sm:$0x33]  }
  0xa3   :  { %1329 = vst.msk [vmem:[#allocation2] sm:$0x3] %vm26_vm1, %v1324_v4  ;;  %1330 = vst.msk [vmem:[#allocation2 + $0x2] sm:$0x3] %vm26_vm1, %v1326_v11  ;;  %v1046_v57 = vrot.slane %v2185_v14, %v2065_v16  ;;  %v1221_v3 = vrot.slane %v2197_v19, %v2065_v16 }
  0xa6   :  { %178 = vrot.lane.b32.xlu0 %v177_v62, %s2011_s18  ;;  %342 = vrot.lane.b32.xlu1 %v2075_v22, %s1988_s13 }
  0xaa   :  { %329 = vrot.lane.b32.xlu0 %v328_v63, %s2012_s19  ;;  %369 = vrot.lane.b32.xlu1 %v2075_v22, %s2013_s20  ;;  %v682_v22 = vrot.slane %v2127_v51, %v2065_v16  ;;  %v1963_v62 = vld [vmem:[#allocation2] ss:$0 sps:$4 sm:$0x33]   ;;  %v1965_v10 = vld [vmem:[#allocation2 + $0x2] ss:$0 sps:$4 sm:$0x33]  }
  0xab   :  { %v1342_v4 = vrot.slane %v1963_v62, %v2065_v16  ;;  %v1964_v5 = vld [vmem:[#allocation2] ss:$0 sps:$4 sm:$0x33]   ;;  %v1517_v14 = vrot.slane %v1965_v10, %v2065_v16  ;;  %v1966_v15 = vld [vmem:[#allocation2 + $0x2] ss:$0 sps:$4 sm:$0x33]  }
  0xac   :  { %v2344_v11 = vld.sshfl [vmem:[#allocation2] sm:$0x3 pattern:$0x76325410] }
  0xad   :  { %v1975_v62 = vld [vmem:[#allocation2 + $0x2] ss:$0 sps:$4 sm:$0x33]  }
  0xae   :  { %356 = vrot.lane.b32.xlu0 %v355_v8, %s2014_s21  ;;  %629 = vrot.lane.b32.xlu1 %v2112_v42, %s1990_s1  ;;  %v1369_v8 = vrot.slane %v1964_v5, %v2065_v16 }
  0xb2   :  { %494 = vrot.lane.b32.xlu0 %v2112_v42, %s1991_s26  ;;  %481 = vrot.lane.b32.xlu1 %v480_v17, %s1992_s27  ;;  %v2352_v17 = vld.sshfl [vmem:[#allocation2 + $0x2] sm:$0x3 pattern:$0x76325410] }
  0xb6   :  { %508 = vrot.lane.b32.xlu1 %v507_v20, %s1994_s29  ;;  %642 = vrot.lane.b32.xlu0 %v2123_v49, %s1993_s28 }
  0xba   :  { %656 = vrot.lane.b32.xlu1 %v655_v21, %s1996_s3  ;;  %669 = vrot.lane.b32.xlu0 %v2123_v49, %s1995_s30 }
  0xbe   :  { %683 = vrot.lane.b32.xlu1 %v682_v22, %s1999_s5  ;;  %521 = vrot.lane.b32.xlu0 %v2112_v42, %s1997_s4  ;;  %v1544_v22 = vrot.slane %v1966_v15, %v2065_v16 }
  0xc2   :  { %535 = vrot.lane.b32.xlu1 %v534_v23, %s2001_s7  ;;  %548 = vrot.lane.b32.xlu0 %v2112_v42, %s2000_s6 }
  0xc6   :  { %562 = vrot.lane.b32.xlu1 %v561_v24, %s2003_s9  ;;  %696 = vrot.lane.b32.xlu0 %v2123_v49, %s2002_s8 }
  0xca   :  { %710 = vrot.lane.b32.xlu1 %v709_v25, %s2005_s11  ;;  %723 = vrot.lane.b32.xlu0 %v2123_v49, %s2004_s10 }
  0xce   :  { %737 = vrot.lane.b32.xlu1 %v736_v26, %s2007_s14  ;;  %575 = vrot.lane.b32.xlu0 %v2112_v42, %s2006_s12  ;;  %v1967_v26 = vld [vmem:[#allocation2] ss:$0 sps:$4 sm:$0x33]  }
  0xd2   :  { %589 = vrot.lane.b32.xlu1 %v588_v27, %s2009_s16  ;;  %602 = vrot.lane.b32.xlu0 %v2112_v42, %s2008_s15 }
  0xd6   :  { %616 = vrot.lane.b32.xlu1 %v615_v29, %s2011_s18  ;;  %750 = vrot.lane.b32.xlu0 %v2123_v49, %s2010_s17  ;;  %v1396_v29 = vrot.slane %v1967_v26, %v2065_v16 }
  0xda   :  { %764 = vrot.lane.b32.xlu1 %v763_v30, %s2012_s19  ;;  %777 = vrot.lane.b32.xlu0 %v2123_v49, %s1988_s13  ;;  %v1968_v30 = vld [vmem:[#allocation2] ss:$0 sps:$4 sm:$0x33]  }
  0xde   :  { %791 = vrot.lane.b32.xlu1 %v790_v32, %s2014_s21  ;;  %804 = vrot.lane.b32.xlu0 %v2123_v49, %s2013_s20 }
  0xe2   :  { %925 = vrot.lane.b32.xlu1 %v2167_v1, %s1991_s26  ;;  %912 = vrot.lane.b32.xlu0 %v911_v33, %s1992_s27 }
  0xe6   :  { %1073 = vrot.lane.b32.xlu1 %v2179_v9, %s1993_s28  ;;  %939 = vrot.lane.b32.xlu0 %v938_v34, %s1994_s29  ;;  %v1969_v34 = vld [vmem:[#allocation2 + $0x2] ss:$0 sps:$4 sm:$0x33]  }
  0xea   :  { %1100 = vrot.lane.b32.xlu1 %v2179_v9, %s1995_s30  ;;  %1087 = vrot.lane.b32.xlu0 %v1086_v35, %s1996_s3 }
  0xee   :  { %952 = vrot.lane.b32.xlu1 %v2167_v1, %s1997_s4  ;;  %1114 = vrot.lane.b32.xlu0 %v1113_v36, %s1999_s5 }
  0xf0   :  { %v57_v38 = vpop.permute.xlu1 %56  ;;  %v192_v39 = vpop.permute.xlu0 %191 }
  0xf1   :  { %59 = vst.msk [vmem:[#allocation3 + $0x4] sm:$0x3] %vm30_vm2, %v57_v38  ;;  %194 = vst.msk [vmem:[#allocation3 + $0x18] sm:$0x3] %vm30_vm2, %v192_v39 }
  0xf2   :  { %979 = vrot.lane.b32.xlu1 %v2167_v1, %s2000_s6  ;;  %966 = vrot.lane.b32.xlu0 %v965_v40, %s2001_s7  ;;  %v1571_v40 = vrot.slane %v1969_v34, %v2065_v16 }
  0xf4   :  { %v206_v42 = vpop.permute.xlu1 %205  ;;  %v43_v43 = vpop.permute.xlu0 %42 }
  0xf5   :  { %209 = vst.msk [vmem:[#allocation3] sm:$0x3] %vm208_vm4, %v206_v42 }
  0xf6   :  { %46 = vst.msk [vmem:[#allocation3] sm:$0xc] %vm45_vm5, %v43_v43  ;;  %1127 = vrot.lane.b32.xlu1 %v2179_v9, %s2002_s8  ;;  %993 = vrot.lane.b32.xlu0 %v992_v44, %s2003_s9 }
  0xf8   :  { %v235_v45 = vpop.permute.xlu1 %234  ;;  %v71_v46 = vpop.permute.xlu0 %70 }
  0xf9   :  { %237 = vst.msk [vmem:[#allocation3 + $0x4] sm:$0x3] %vm208_vm4, %v235_v45 }
  0xfa   :  { %73 = vst.msk [vmem:[#allocation3 + $0x4] sm:$0xc] %vm45_vm5, %v71_v46  ;;  %1154 = vrot.lane.b32.xlu1 %v2179_v9, %s2004_s10  ;;  %1141 = vrot.lane.b32.xlu0 %v1140_v47, %s2005_s11  ;;  %v1971_v47 = vld [vmem:[#allocation2] ss:$0 sps:$4 sm:$0x33]  }
  0xfc   :  { %v84_v48 = vpop.permute.xlu1 %83  ;;  %v221_v49 = vpop.permute.xlu0 %220 }
  0xfd   :  { %86 = vst.msk [vmem:[#allocation3 + $0x8] sm:$0x3] %vm30_vm2, %v84_v48 }
  0xfe   :  { %224 = vst.msk [vmem:[#allocation3] sm:$0xc] %vm223_vm6, %v221_v49  ;;  %1006 = vrot.lane.b32.xlu1 %v2167_v1, %s2006_s12  ;;  %1168 = vrot.lane.b32.xlu0 %v1167_v50, %s2007_s14 }
 0x100   :  { %v111_v51 = vpop.permute.xlu1 %110  ;;  %v249_v52 = vpop.permute.xlu0 %248 }
 0x101   :  { %113 = vst.msk [vmem:[#allocation3 + $0xc] sm:$0x3] %vm30_vm2, %v111_v51  ;;  %v1450_v51 = vrot.slane %v1971_v47, %v2065_v16 }
 0x102   :  { %251 = vst.msk [vmem:[#allocation3 + $0x4] sm:$0xc] %vm223_vm6, %v249_v52  ;;  %1033 = vrot.lane.b32.xlu1 %v2167_v1, %s2008_s15  ;;  %1020 = vrot.lane.b32.xlu0 %v1019_v53, %s2009_s16  ;;  %v1972_v52 = vld [vmem:[#allocation2] ss:$0 sps:$4 sm:$0x33]  }
 0x103   :  { %v2401_v53 = vld [vmem:[%s2539_s0] sm:$0xf] }
 0x104   :  { %v262_v55 = vpop.permute.xlu1 %261  ;;  %v98_v56 = vpop.permute.xlu0 %97 }
 0x105   :  { %v373_v54 = vld [vmem:[#allocation3] sm:$0xf]  ;;  %264 = vst.msk [vmem:[#allocation3 + $0x8] sm:$0x3] %vm208_vm4, %v262_v55 }
 0x106   :  { %470 = vst.msk [vmem:[#allocation3] sm:$0x3] %vm30_vm2, %v2110_v41  ;;  %1181 = vrot.lane.b32.xlu1 %v2179_v9, %s2010_s17  ;;  %1047 = vrot.lane.b32.xlu0 %v1046_v57, %s2011_s18  ;;  %v1973_v57 = vld [vmem:[#allocation2 + $0x2] ss:$0 sps:$4 sm:$0x33]  }
 0x107   :  { %100 = vst.msk [vmem:[#allocation3 + $0x8] sm:$0xc] %vm45_vm5, %v98_v56  ;;  %v1477_v56 = vrot.slane %v1972_v52, %v2065_v16 }
 0x108   :  { %v289_v59 = vpop.permute.xlu1 %288  ;;  %v125_v60 = vpop.permute.xlu0 %124 }
 0x109   :  { %v374_v58 = vld [vmem:[#allocation3 + $0x4] sm:$0xf]  ;;  %291 = vst.msk [vmem:[#allocation3 + $0xc] sm:$0x3] %vm208_vm4, %v289_v59 }
 0x10a   :  { %127 = vst.msk [vmem:[#allocation3 + $0xc] sm:$0xc] %vm45_vm5, %v125_v60  ;;  %v1765_v41 = vcombine.low %v373_v54, %v374_v58  ;;  %1208 = vrot.lane.b32.xlu1 %v2179_v9, %s1988_s13  ;;  %1195 = vrot.lane.b32.xlu0 %v1194_v61, %s2012_s19  ;;  %v1625_v60 = vrot.slane %v1973_v57, %v2065_v16 }
 0x10c   :  { %1854 = vmatpush3.bf16.msra.mxu0 %v1765_v41  ;;  %v138_v63 = vpop.permute.xlu1 %137  ;;  %v276_v2 = vpop.permute.xlu0 %275 }
 0x10d   :  { %1855 = vmatprep.subr.bf16.mxu0 %v1998_v37  ;;  %140 = vst.msk [vmem:[#allocation3 + $0x10] sm:$0x3] %vm30_vm2, %v138_v63 }
 0x10e   :  { %278 = vst.msk [vmem:[#allocation3 + $0x8] sm:$0xc] %vm223_vm6, %v276_v2  ;;  %1222 = vrot.lane.b32.xlu0 %v1221_v3, %s2014_s21  ;;  %1343 = vrot.lane.b32.xlu1 %v1342_v4, %s1992_s27  ;;  %v1652_v2 = vrot.slane %v1975_v62, %v2065_v16 }
 0x110   :  { %v165_v6 = vpop.permute.xlu1 %164  ;;  %v303_v7 = vpop.permute.xlu0 %302 }
 0x111   :  { %167 = vst.msk [vmem:[#allocation3 + $0x14] sm:$0x3] %vm30_vm2, %v165_v6 }
 0x112   :  { %305 = vst.msk [vmem:[#allocation3 + $0xc] sm:$0xc] %vm223_vm6, %v303_v7  ;;  %1356 = vrot.lane.b32.xlu0 %v2344_v11, %s1991_s26  ;;  %1370 = vrot.lane.b32.xlu1 %v1369_v8, %s1994_s29 }
 0x114   :  { %v316_v12 = vpop.permute.xlu1 %315  ;;  %v152_v13 = vpop.permute.xlu0 %151 }
 0x115   :  { %318 = vst.msk [vmem:[#allocation3 + $0x10] sm:$0x3] %vm208_vm4, %v316_v12  ;;  %v375_v18 = vld [vmem:[#allocation3 + $0x8] sm:$0xf] }
 0x116   :  { %154 = vst.msk [vmem:[#allocation3 + $0x10] sm:$0xc] %vm45_vm5, %v152_v13  ;;  %1504 = vrot.lane.b32.xlu0 %v2352_v17, %s1993_s28  ;;  %1518 = vrot.lane.b32.xlu1 %v1517_v14, %s1996_s3 }
 0x118   :  { %v343_v20 = vpop.permute.xlu1 %342  ;;  %v179_v21 = vpop.permute.xlu0 %178 }
 0x119   :  { %v376_v19 = vld [vmem:[#allocation3 + $0xc] sm:$0xf]  ;;  %345 = vst.msk [vmem:[#allocation3 + $0x14] sm:$0x3] %vm208_vm4, %v343_v20 }
 0x11a   :  { %181 = vst.msk [vmem:[#allocation3 + $0x14] sm:$0xc] %vm45_vm5, %v179_v21  ;;  %v1766_v23 = vcombine.low %v375_v18, %v376_v19  ;;  %1531 = vrot.lane.b32.xlu0 %v2352_v17, %s1995_s30  ;;  %1545 = vrot.lane.b32.xlu1 %v1544_v22, %s1999_s5 }
 0x11c   :  { %1856 = vmatpush3.bf16.msra.mxu0 %v1766_v23  ;;  %v370_v24 = vpop.permute.xlu1 %369  ;;  %v330_v25 = vpop.permute.xlu0 %329 }
 0x11d   :  { %1857 = vmatprep.subr.bf16.mxu0 %v1998_v37  ;;  %372 = vst.msk [vmem:[#allocation3 + $0x18] sm:$0x3] %vm208_vm4, %v370_v24 }
 0x11e   :  { %332 = vst.msk [vmem:[#allocation3 + $0x10] sm:$0xc] %vm223_vm6, %v330_v25  ;;  %1060 = vrot.lane.b32.xlu0 %v2167_v1, %s1990_s1  ;;  %1235 = vrot.lane.b32.xlu1 %v2179_v9, %s2013_s20  ;;  %v1423_v1 = vrot.slane %v1968_v30, %v2065_v16  ;;  %v1970_v9 = vld [vmem:[#allocation2 + $0x2] ss:$0 sps:$4 sm:$0x33]  }
 0x11f   :  { %v1598_v46 = vrot.slane %v1970_v9, %v2065_v16  ;;  %v1331_v30 = vld [vmem:[#allocation2] sm:$0x3] }
 0x120   :  { %v630_v27 = vpop.permute.xlu1 %629  ;;  %v357_v28 = vpop.permute.xlu0 %356 }
 0x121   :  { %359 = vst.msk [vmem:[#allocation3 + $0x14] sm:$0xc] %vm223_vm6, %v357_v28 }
 0x122   :  { %1383 = vrot.lane.b32.xlu0 %v2344_v11, %s1997_s4  ;;  %1397 = vrot.lane.b32.xlu1 %v1396_v29, %s2001_s7 }
 0x124   :  { %v379_v31 = vld [vmem:[#allocation3 + $0x18] sm:$0x3]  ;;  %v482_v32 = vpop.permute.xlu1 %481  ;;  %v495_v33 = vpop.permute.xlu0 %494 }
 0x125   :  { %632 = vst.msk [vmem:[#allocation3 + $0x18] sm:$0x3] %vm30_vm2, %v630_v27  ;;  %497 = vst.msk [vmem:[#allocation3 + $0x4] sm:$0x3] %vm30_vm2, %v495_v33  ;;  %v377_v35 = vld [vmem:[#allocation3 + $0x10] sm:$0xf]  ;;  %v1768_v43 = vcombine.low %v379_v31, %v379_v31 }
 0x126   :  { %484 = vst.msk [vmem:[#allocation3] sm:$0xc] %vm45_vm5, %v482_v32  ;;  %1410 = vrot.lane.b32.xlu0 %v2344_v11, %s2000_s6  ;;  %1424 = vrot.lane.b32.xlu1 %v1423_v1, %s2003_s9 }
 0x127   :  { %v407_v48 = vsel %vm405_vm7, %v1768_v43, 0 }
 0x128   :  { %v378_v36 = vld [vmem:[#allocation3 + $0x14] sm:$0xf]  ;;  %v509_v38 = vpop.permute.xlu1 %508  ;;  %v643_v39 = vpop.permute.xlu0 %642 }
 0x129   :  { %511 = vst.msk [vmem:[#allocation3 + $0x4] sm:$0xc] %vm45_vm5, %v509_v38  ;;  %v1767_v42 = vcombine.low %v377_v35, %v378_v36 }
 0x12a   :  { %645 = vst.msk [vmem:[#allocation3] sm:$0x3] %vm208_vm4, %v643_v39  ;;  %1558 = vrot.lane.b32.xlu0 %v2352_v17, %s2002_s8  ;;  %1572 = vrot.lane.b32.xlu1 %v1571_v40, %s2005_s11 }
 0x12b   :  { %1858 = vmatpush3.bf16.msra.mxu0 %v1767_v42 }
 0x12c   :  { %v657_v44 = vpop.permute.xlu1 %656  ;;  %v670_v45 = vpop.permute.xlu0 %669  ;;  %1859 = vmatprep.subr.bf16.mxu0 %v1998_v37 }
 0x12d   :  { %659 = vst.msk [vmem:[#allocation3] sm:$0xc] %vm223_vm6, %v657_v44 }
 0x12e   :  { %672 = vst.msk [vmem:[#allocation3 + $0x4] sm:$0x3] %vm208_vm4, %v670_v45  ;;  %1585 = vrot.lane.b32.xlu0 %v2352_v17, %s2004_s10  ;;  %1599 = vrot.lane.b32.xlu1 %v1598_v46, %s2007_s14 }
 0x12f   :  { %1860 = vmatpush3.bf16.msra.mxu0 %v407_v48 }
 0x130   :  { %v684_v49 = vpop.permute.xlu1 %683  ;;  %v522_v50 = vpop.permute.xlu0 %521  ;;  %1877 = vmatprep.subr.bf16.mxu0 %v1998_v37 }
 0x131   :  { %686 = vst.msk [vmem:[#allocation3 + $0x4] sm:$0xc] %vm223_vm6, %v684_v49 }
 0x132   :  { %524 = vst.msk [vmem:[#allocation3 + $0x8] sm:$0x3] %vm30_vm2, %v522_v50  ;;  %1437 = vrot.lane.b32.xlu0 %v2344_v11, %s2006_s12  ;;  %1451 = vrot.lane.b32.xlu1 %v1450_v51, %s2009_s16 }
 0x133   :  { %1862 = vmatmul.mubr.msk.bf16.vlgmr.msra.gmra.mrb[0].mxu0 %vm401_vm8, %v2401_v53 }
 0x134   :  { %v536_v54 = vpop.permute.xlu1 %535  ;;  %v549_v55 = vpop.permute.xlu0 %548  ;;  %1885 = vmatprep.mubr.msk.bf16.mxu0 %vm2015_vm3, %v1998_v37 }
 0x135   :  { %538 = vst.msk [vmem:[#allocation3 + $0x8] sm:$0xc] %vm45_vm5, %v536_v54 }
 0x136   :  { %551 = vst.msk [vmem:[#allocation3 + $0xc] sm:$0x3] %vm30_vm2, %v549_v55  ;;  %1464 = vrot.lane.b32.xlu0 %v2344_v11, %s2008_s15  ;;  %1478 = vrot.lane.b32.xlu1 %v1477_v56, %s2011_s18 }
 0x138   :  { %v563_v58 = vpop.permute.xlu1 %562  ;;  %v697_v59 = vpop.permute.xlu0 %696  ;;  %v1974_v61 = vld [vmem:[#allocation3] sm:$0xff]  }
 0x139   :  { %565 = vst.msk [vmem:[#allocation3 + $0xc] sm:$0xc] %vm45_vm5, %v563_v58  ;;  %1866 = vmatpush3.bf16.msra.mxu1 %v1974_v61 }
 0x13a   :  { %699 = vst.msk [vmem:[#allocation3 + $0x8] sm:$0x3] %vm208_vm4, %v697_v59  ;;  %1612 = vrot.lane.b32.xlu0 %v2352_v17, %s2010_s17  ;;  %1626 = vrot.lane.b32.xlu1 %v1625_v60, %s2012_s19 }
 0x13b   :  { %901 = vst.msk [vmem:[#allocation3] sm:$0x3] %vm30_vm2, %v2165_v0  ;;  %1867 = vmatprep.subr.bf16.mxu1 %v1998_v37 }
 0x13c   :  { %v711_v41 = vpop.permute.xlu1 %710  ;;  %v724_v63 = vpop.permute.xlu0 %723 }
 0x13d   :  { %713 = vst.msk [vmem:[#allocation3 + $0x8] sm:$0xc] %vm223_vm6, %v711_v41 }
 0x13e   :  { %726 = vst.msk [vmem:[#allocation3 + $0xc] sm:$0x3] %vm208_vm4, %v724_v63  ;;  %1639 = vrot.lane.b32.xlu0 %v2352_v17, %s1988_s13  ;;  %1653 = vrot.lane.b32.xlu1 %v1652_v2, %s2014_s21 }
 0x140   :  { %v738_v0 = vpop.permute.xlu1 %737  ;;  %v576_v3 = vpop.permute.xlu0 %575 }
 0x141   :  { %740 = vst.msk [vmem:[#allocation3 + $0xc] sm:$0xc] %vm223_vm6, %v738_v0 }
 0x142   :  { %578 = vst.msk [vmem:[#allocation3 + $0x10] sm:$0x3] %vm30_vm2, %v576_v3  ;;  %1666 = vrot.lane.b32.xlu1 %v2352_v17, %s2013_s20  ;;  %1491 = vrot.lane.b32.xlu0 %v2344_v11, %s1990_s1 }
 0x144   :  { %v590_v16 = vpop.permute.xlu1 %589  ;;  %v603_v4 = vpop.permute.xlu0 %602 }
 0x145   :  { %592 = vst.msk [vmem:[#allocation3 + $0x10] sm:$0xc] %vm45_vm5, %v590_v16 }
 0x146   :  { %605 = vst.msk [vmem:[#allocation3 + $0x14] sm:$0x3] %vm30_vm2, %v603_v4 }
 0x148   :  { %v617_v5 = vpop.permute.xlu1 %616  ;;  %v751_v6 = vpop.permute.xlu0 %750  ;;  %v1976_v7 = vld [vmem:[#allocation3 + $0x8] sm:$0xff]  }
 0x149   :  { %619 = vst.msk [vmem:[#allocation3 + $0x14] sm:$0xc] %vm45_vm5, %v617_v5  ;;  %1868 = vmatpush3.bf16.msra.mxu1 %v1976_v7 }
 0x14a   :  { %753 = vst.msk [vmem:[#allocation3 + $0x10] sm:$0x3] %vm208_vm4, %v751_v6  ;;  %1869 = vmatprep.subr.bf16.mxu1 %v1998_v37 }
 0x14c   :  { %v765_v8 = vpop.permute.xlu1 %764  ;;  %v778_v10 = vpop.permute.xlu0 %777 }
 0x14d   :  { %767 = vst.msk [vmem:[#allocation3 + $0x10] sm:$0xc] %vm223_vm6, %v765_v8 }
 0x14e   :  { %780 = vst.msk [vmem:[#allocation3 + $0x14] sm:$0x3] %vm208_vm4, %v778_v10 }
 0x150   :  { %v792_v11 = vpop.permute.xlu1 %791  ;;  %v805_v12 = vpop.permute.xlu0 %804 }
 0x151   :  { %794 = vst.msk [vmem:[#allocation3 + $0x14] sm:$0xc] %vm223_vm6, %v792_v11 }
 0x152   :  { %807 = vst.msk [vmem:[#allocation3 + $0x18] sm:$0x3] %vm208_vm4, %v805_v12 }
 0x154   :  { %v926_v13 = vpop.permute.xlu1 %925  ;;  %v913_v14 = vpop.permute.xlu0 %912 }
 0x155   :  { %928 = vst.msk [vmem:[#allocation3 + $0x4] sm:$0x3] %vm30_vm2, %v926_v13 }
 0x156   :  { %915 = vst.msk [vmem:[#allocation3] sm:$0xc] %vm45_vm5, %v913_v14 }
 0x158   :  { %v1074_v15 = vpop.permute.xlu1 %1073  ;;  %v940_v17 = vpop.permute.xlu0 %939  ;;  %v1977_v18 = vld [vmem:[#allocation3 + $0x10] sm:$0xff]  }
 0x159   :  { %1076 = vst.msk [vmem:[#allocation3] sm:$0x3] %vm208_vm4, %v1074_v15  ;;  %v1978_v19 = vld [vmem:[#allocation3 + $0x18] ss:$0 sps:$4 sm:$0x33]   ;;  %1870 = vmatpush3.bf16.msra.mxu1 %v1977_v18 }
 0x15a   :  { %942 = vst.msk [vmem:[#allocation3 + $0x4] sm:$0xc] %vm45_vm5, %v940_v17  ;;  %1871 = vmatprep.subr.bf16.mxu1 %v1998_v37  ;;  %v837_v22 = vsel %vm405_vm7, %v1978_v19, 0 }
 0x15c   :  { %v1101_v20 = vpop.permute.xlu1 %1100  ;;  %v1088_v21 = vpop.permute.xlu0 %1087 }
 0x15d   :  { %1103 = vst.msk [vmem:[#allocation3 + $0x4] sm:$0x3] %vm208_vm4, %v1101_v20  ;;  %1872 = vmatpush3.bf16.msra.mxu1 %v837_v22 }
 0x15e   :  { %1090 = vst.msk [vmem:[#allocation3] sm:$0xc] %vm223_vm6, %v1088_v21  ;;  %1889 = vmatprep.subr.bf16.mxu1 %v1998_v37 }
 0x160   :  { %v953_v23 = vpop.permute.xlu1 %952  ;;  %v1115_v24 = vpop.permute.xlu0 %1114  ;;  %1874 = vmatmul.mubr.msk.bf16.vlgmr.msra.gmra.mrb[0].mxu1 %vm401_vm8, %v2401_v53 }
 0x161   :  { %955 = vst.msk [vmem:[#allocation3 + $0x8] sm:$0x3] %vm30_vm2, %v953_v23  ;;  %1897 = vmatprep.mubr.msk.bf16.mxu1 %vm2015_vm3, %v1998_v37 }
 0x162   :  { %1117 = vst.msk [vmem:[#allocation3 + $0x4] sm:$0xc] %vm223_vm6, %v1115_v24 }
 0x164   :  { %v980_v25 = vpop.permute.xlu1 %979  ;;  %v967_v26 = vpop.permute.xlu0 %966 }
 0x165   :  { %982 = vst.msk [vmem:[#allocation3 + $0xc] sm:$0x3] %vm30_vm2, %v980_v25 }
 0x166   :  { %969 = vst.msk [vmem:[#allocation3 + $0x8] sm:$0xc] %vm45_vm5, %v967_v26 }
 0x168   :  { %v1128_v27 = vpop.permute.xlu1 %1127  ;;  %v994_v28 = vpop.permute.xlu0 %993 }
 0x169   :  { %v1979_v29 = vld [vmem:[#allocation3] sm:$0xff]   ;;  %1130 = vst.msk [vmem:[#allocation3 + $0x8] sm:$0x3] %vm208_vm4, %v1128_v27 }
 0x16a   :  { %996 = vst.msk [vmem:[#allocation3 + $0xc] sm:$0xc] %vm45_vm5, %v994_v28  ;;  %1878 = vmatpush3.bf16.msra.mxu0 %v1979_v29 }
 0x16b   :  { %1332 = vst.msk [vmem:[#allocation3] sm:$0x3] %vm30_vm2, %v1331_v30  ;;  %1879 = vmatprep.subr.bf16.mxu0 %v1998_v37 }
 0x16c   :  { %v1155_v31 = vpop.permute.xlu1 %1154  ;;  %v1142_v32 = vpop.permute.xlu0 %1141 }
 0x16d   :  { %1157 = vst.msk [vmem:[#allocation3 + $0xc] sm:$0x3] %vm208_vm4, %v1155_v31 }
 0x16e   :  { %1144 = vst.msk [vmem:[#allocation3 + $0x8] sm:$0xc] %vm223_vm6, %v1142_v32 }
 0x170   :  { %v1007_v33 = vpop.permute.xlu1 %1006  ;;  %v1169_v1 = vpop.permute.xlu0 %1168 }
 0x171   :  { %1009 = vst.msk [vmem:[#allocation3 + $0x10] sm:$0x3] %vm30_vm2, %v1007_v33 }
 0x172   :  { %1171 = vst.msk [vmem:[#allocation3 + $0xc] sm:$0xc] %vm223_vm6, %v1169_v1 }
 0x174   :  { %v1034_v34 = vpop.permute.xlu1 %1033  ;;  %v1021_v9 = vpop.permute.xlu0 %1020 }
 0x175   :  { %1036 = vst.msk [vmem:[#allocation3 + $0x14] sm:$0x3] %vm30_vm2, %v1034_v34 }
 0x176   :  { %1023 = vst.msk [vmem:[#allocation3 + $0x10] sm:$0xc] %vm45_vm5, %v1021_v9 }
 0x178   :  { %v1182_v35 = vpop.permute.xlu1 %1181  ;;  %v1048_v36 = vpop.permute.xlu0 %1047 }
 0x179   :  { %v1980_v38 = vld [vmem:[#allocation3 + $0x8] sm:$0xff]   ;;  %1184 = vst.msk [vmem:[#allocation3 + $0x10] sm:$0x3] %vm208_vm4, %v1182_v35 }
 0x17a   :  { %1050 = vst.msk [vmem:[#allocation3 + $0x14] sm:$0xc] %vm45_vm5, %v1048_v36  ;;  %1880 = vmatpush3.bf16.msra.mxu0 %v1980_v38 }
 0x17b   :  { %1881 = vmatprep.subr.bf16.mxu0 %v1998_v37 }
 0x17c   :  { %v1209_v39 = vpop.permute.xlu1 %1208  ;;  %v1196_v40 = vpop.permute.xlu0 %1195 }
 0x17d   :  { %1211 = vst.msk [vmem:[#allocation3 + $0x14] sm:$0x3] %vm208_vm4, %v1209_v39 }
 0x17e   :  { %1198 = vst.msk [vmem:[#allocation3 + $0x10] sm:$0xc] %vm223_vm6, %v1196_v40 }
 0x180   :  { %v1344_v42 = vpop.permute.xlu1 %1343  ;;  %v1223_v43 = vpop.permute.xlu0 %1222 }
 0x181   :  { %1346 = vst.msk [vmem:[#allocation3] sm:$0xc] %vm45_vm5, %v1344_v42 }
 0x182   :  { %1225 = vst.msk [vmem:[#allocation3 + $0x14] sm:$0xc] %vm223_vm6, %v1223_v43 }
 0x184   :  { %v1371_v44 = vpop.permute.xlu1 %1370  ;;  %v1357_v45 = vpop.permute.xlu0 %1356 }
 0x185   :  { %1373 = vst.msk [vmem:[#allocation3 + $0x4] sm:$0xc] %vm45_vm5, %v1371_v44 }
 0x186   :  { %1359 = vst.msk [vmem:[#allocation3 + $0x4] sm:$0x3] %vm30_vm2, %v1357_v45 }
 0x188   :  { %v1519_v46 = vpop.permute.xlu1 %1518  ;;  %v1505_v47 = vpop.permute.xlu0 %1504 }
 0x189   :  { %v1981_v48 = vld [vmem:[#allocation3 + $0x10] sm:$0xff]   ;;  %1521 = vst.msk [vmem:[#allocation3] sm:$0xc] %vm223_vm6, %v1519_v46 }
 0x18a   :  { %1507 = vst.msk [vmem:[#allocation3] sm:$0x3] %vm208_vm4, %v1505_v47  ;;  %1882 = vmatpush3.bf16.msra.mxu0 %v1981_v48 }
 0x18b   :  { %1883 = vmatprep.subr.bf16.mxu0 %v1998_v37 }
 0x18c   :  { %v1546_v49 = vpop.permute.xlu1 %1545  ;;  %v1532_v50 = vpop.permute.xlu0 %1531 }
 0x18d   :  { %1548 = vst.msk [vmem:[#allocation3 + $0x4] sm:$0xc] %vm223_vm6, %v1546_v49 }
 0x18e   :  { %1534 = vst.msk [vmem:[#allocation3 + $0x4] sm:$0x3] %vm208_vm4, %v1532_v50 }
 0x190   :  { %v1236_v51 = vpop.permute.xlu1 %1235  ;;  %v1061_v52 = vpop.permute.xlu0 %1060 }
 0x191   :  { %1063 = vst.msk [vmem:[#allocation3 + $0x18] sm:$0x3] %vm30_vm2, %v1061_v52 }
 0x192   :  { %1238 = vst.msk [vmem:[#allocation3 + $0x18] sm:$0x3] %vm208_vm4, %v1236_v51 }
 0x194   :  { %v1398_v54 = vpop.permute.xlu1 %1397  ;;  %v1384_v55 = vpop.permute.xlu0 %1383 }
 0x195   :  { %v1982_v56 = vld [vmem:[#allocation3] sm:$0xff]   ;;  %1400 = vst.msk [vmem:[#allocation3 + $0x8] sm:$0xc] %vm45_vm5, %v1398_v54 }
 0x196   :  { %1386 = vst.msk [vmem:[#allocation3 + $0x8] sm:$0x3] %vm30_vm2, %v1384_v55  ;;  %1890 = vmatpush3.bf16.msra.mxu1 %v1982_v56 }
 0x197   :  { %1891 = vmatprep.subr.bf16.mxu1 %v1998_v37 }
 0x198   :  { %v1425_v57 = vpop.permute.xlu1 %1424  ;;  %v1411_v58 = vpop.permute.xlu0 %1410 }
 0x199   :  { %1427 = vst.msk [vmem:[#allocation3 + $0xc] sm:$0xc] %vm45_vm5, %v1425_v57  ;;  %v1983_v59 = vld [vmem:[#allocation3 + $0x18] ss:$0 sps:$4 sm:$0x33]  }
 0x19a   :  { %1413 = vst.msk [vmem:[#allocation3 + $0xc] sm:$0x3] %vm30_vm2, %v1411_v58  ;;  %v1268_v60 = vsel %vm405_vm7, %v1983_v59, 0 }
 0x19b   :  { %1884 = vmatpush3.bf16.msra.mxu0 %v1268_v60 }
 0x19c   :  { %v1573_v61 = vpop.permute.xlu1 %1572  ;;  %v1559_v62 = vpop.permute.xlu0 %1558 }
 0x19d   :  { %1575 = vst.msk [vmem:[#allocation3 + $0x8] sm:$0xc] %vm223_vm6, %v1573_v61 }
 0x19e   :  { %1561 = vst.msk [vmem:[#allocation3 + $0x8] sm:$0x3] %vm208_vm4, %v1559_v62  ;;  %1886 = vmatmul.mubr.msk.bf16.vlgmr.msra.gmra.mrb[4].mxu0 %vm401_vm8, %v2401_v53 }
 0x1a0   :  { %v1600_v41 = vpop.permute.xlu1 %1599  ;;  %v1586_v63 = vpop.permute.xlu0 %1585 }
 0x1a1   :  { %1602 = vst.msk [vmem:[#allocation3 + $0xc] sm:$0xc] %vm223_vm6, %v1600_v41 }
 0x1a2   :  { %1588 = vst.msk [vmem:[#allocation3 + $0xc] sm:$0x3] %vm208_vm4, %v1586_v63 }
 0x1a4   :  { %v1452_v2 = vpop.permute.xlu1 %1451  ;;  %v1438_v0 = vpop.permute.xlu0 %1437 }
 0x1a5   :  { %1454 = vst.msk [vmem:[#allocation3 + $0x10] sm:$0xc] %vm45_vm5, %v1452_v2 }
 0x1a6   :  { %1440 = vst.msk [vmem:[#allocation3 + $0x10] sm:$0x3] %vm30_vm2, %v1438_v0 }
 0x1a8   :  { %v1479_v3 = vpop.permute.xlu1 %1478  ;;  %v1465_v16 = vpop.permute.xlu0 %1464 }
 0x1a9   :  { %v1984_v4 = vld [vmem:[#allocation3 + $0x8] sm:$0xff]   ;;  %1481 = vst.msk [vmem:[#allocation3 + $0x14] sm:$0xc] %vm45_vm5, %v1479_v3 }
 0x1aa   :  { %1467 = vst.msk [vmem:[#allocation3 + $0x14] sm:$0x3] %vm30_vm2, %v1465_v16  ;;  %1892 = vmatpush3.bf16.msra.mxu1 %v1984_v4 }
 0x1ab   :  { %1893 = vmatprep.subr.bf16.mxu1 %v1998_v37 }
 0x1ac   :  { %v1627_v5 = vpop.permute.xlu1 %1626  ;;  %v1613_v6 = vpop.permute.xlu0 %1612 }
 0x1ad   :  { %1629 = vst.msk [vmem:[#allocation3 + $0x10] sm:$0xc] %vm223_vm6, %v1627_v5 }
 0x1ae   :  { %1615 = vst.msk [vmem:[#allocation3 + $0x10] sm:$0x3] %vm208_vm4, %v1613_v6 }
 0x1b0   :  { %v1654_v7 = vpop.permute.xlu1 %1653  ;;  %v1640_v8 = vpop.permute.xlu0 %1639 }
 0x1b1   :  { %1656 = vst.msk [vmem:[#allocation3 + $0x14] sm:$0xc] %vm223_vm6, %v1654_v7 }
 0x1b2   :  { %1642 = vst.msk [vmem:[#allocation3 + $0x14] sm:$0x3] %vm208_vm4, %v1640_v8 }
 0x1b4   :  { %v1667_v10 = vpop.permute.xlu1 %1666  ;;  %v1492_v11 = vpop.permute.xlu0 %1491 }
 0x1b5   :  { %1494 = vst.msk [vmem:[#allocation3 + $0x18] sm:$0x3] %vm30_vm2, %v1492_v11 }
 0x1b6   :  { %1669 = vst.msk [vmem:[#allocation3 + $0x18] sm:$0x3] %vm208_vm4, %v1667_v10 }
 0x1b9   :  { %v1985_v12 = vld [vmem:[#allocation3 + $0x10] sm:$0xff]  }
 0x1ba   :  { %1894 = vmatpush3.bf16.msra.mxu1 %v1985_v12 }
 0x1bb   :  { %1895 = vmatprep.subr.bf16.mxu1 %v1998_v37 }
 0x1bd   :  { %v1986_v13 = vld [vmem:[#allocation3 + $0x18] ss:$0 sps:$4 sm:$0x33]  }
 0x1be   :  { %v1699_v14 = vsel %vm405_vm7, %v1986_v13, 0 }
 0x1bf   :  { %1896 = vmatpush3.bf16.msra.mxu1 %v1699_v14 }
 0x1c2   :  { %1898 = vmatmul.mubr.msk.bf16.vlgmr.msra.gmra.mrb[4].mxu1 %vm401_vm8, %v2401_v53 }
 0x206   :  { %v443_v15 = vpop.f32.mrb[0].mxu0 }
 0x207   :  { %v449_v17 = vmul.f32 0.5, %v443_v15  ;;  %v1863_v18 = vpop.f32.mrb[1].mxu0 }
 0x208   :  { %v446_v19 = vpop.f32.mrb[2].mxu0 }
 0x209   :  { %vm451_vm10 = vcmp.ge.f32.partialorder %v449_v17, 0.5  ;;  %v1864_v20 = vpop.f32.mrb[3].mxu0 }
 0x20a   :  { %v452_v21 = vsel %vm451_vm10, 1.0, %v1998_v37  ;;  %v455_v22 = vsel %vm451_vm10, 0.0, %v449_v17 }
 0x20b   :  { %454 = vst.msk [vmem:[%s2540_s2] sm:$0xff] %vm453_vm9, %v452_v21 }
 0x233   :  { %v873_v23 = vpop.f32.mrb[0].mxu1 }
 0x234   :  { %v879_v24 = vsub.f32 %v873_v23, %v455_v22  ;;  %v1875_v25 = vpop.f32.mrb[1].mxu1 }
 0x235   :  { %v876_v26 = vpop.f32.mrb[2].mxu1 }
 0x236   :  { %v880_v53 = vmul.f32 0.5, %v879_v24  ;;  %v1876_v27 = vpop.f32.mrb[3].mxu1 }
 0x238   :  { %v881_v28 = vadd.f32 %v880_v53, %v455_v22 }
 0x23a   :  { %vm882_vm11 = vcmp.ge.f32.partialorder %v881_v28, 0.5 }
 0x23b   :  { %v883_v29 = vsel %vm882_vm11, 1.0, %v1998_v37  ;;  %v886_v30 = vsel %vm882_vm11, 0.0, %v881_v28 }
 0x23c   :  { %1790 = vst.msk [vmem:[%s2540_s2 + $0x8] sm:$0xff] %vm453_vm9, %v883_v29 }
 0x271   :  { %v1304_v31 = vpop.f32.mrb[4].mxu0 }
 0x272   :  { %v1310_v32 = vsub.f32 %v1304_v31, %v886_v30  ;;  %v1887_v33 = vpop.f32.mrb[5].mxu0 }
 0x273   :  { %v1307_v1 = vpop.f32.mrb[6].mxu0 }
 0x274   :  { %v1311_v34 = vmul.f32 0.5, %v1310_v32  ;;  %v1888_v9 = vpop.f32.mrb[7].mxu0 }
 0x276   :  { %v1312_v35 = vadd.f32 %v1311_v34, %v886_v30 }
 0x278   :  { %vm1313_vm12 = vcmp.ge.f32.partialorder %v1312_v35, 0.5 }
 0x279   :  { %v1314_v36 = vsel %vm1313_vm12, 1.0, %v1998_v37  ;;  %v1317_v38 = vsel %vm1313_vm12, 0.0, %v1312_v35 }
 0x27a   :  { %1811 = vst.msk [vmem:[%s2540_s2 + $0x10] sm:$0xff] %vm453_vm9, %v1314_v36 }
 0x295   :  { %v1735_v39 = vpop.f32.mrb[4].mxu1 }
 0x296   :  { %v1741_v40 = vsub.f32 %v1735_v39, %v1317_v38  ;;  %v1899_v42 = vpop.f32.mrb[5].mxu1 }
 0x297   :  { %v1738_v43 = vpop.f32.mrb[6].mxu1 }
 0x298   :  { %v1742_v44 = vmul.f32 0.5, %v1741_v40  ;;  %v1900_v45 = vpop.f32.mrb[7].mxu1 }
 0x29a   :  { %v1743_v46 = vadd.f32 %v1742_v44, %v1317_v38 }
 0x29c   :  { %vm1744_vm13 = vcmp.ge.f32.partialorder %v1743_v46, 0.5 }
 0x29d   :  { %v1745_v47 = vsel %vm1744_vm13, 1.0, %v1998_v37 }
 0x29e   :  { %1832 = vst.msk [vmem:[%s2540_s2 + $0x18] sm:$0xff] %vm453_vm9, %v1745_v47 }

</bundles_post_ra>
